<compile_context>
chip_gen: v5e
topology: v5e:2x2
jax: 0.10.0
libtpu: 0.0.40
codegen_flags: <defaults>
</compile_context>

<pallas_src>
import functools

import jax
import jax.numpy as jnp
from jax.experimental import pallas as pl
from jax.experimental.pallas import tpu as pltpu


# --------------------------------------------------------------------------
# Mapping network: one fused kernel
# --------------------------------------------------------------------------

def _mapping_kernel(*refs, n_map_layers):
    """PixelNorm -> z_mpl -> LReLU(0.01); c_mpl -> LReLU(0.01); concat;
       n_map_layers x [Linear -> LReLU(0.2) -> PixelNorm]; AdaIN affine."""
    z_ref, c_ref, zw_ref, zb_ref, cw_ref, cb_ref = refs[:6]
    idx = 6
    map_refs = refs[idx: idx + 2 * n_map_layers]
    idx += 2 * n_map_layers
    aw_ref, ab_ref = refs[idx], refs[idx + 1]
    w_out_ref, style_out_ref = refs[idx + 2], refs[idx + 3]

    def pixel_norm(x):
        return x / jnp.sqrt(jnp.mean(x * x, axis=1, keepdims=True) + 1e-8)

    def lrelu(x, slope):
        return jnp.where(x >= 0.0, x, slope * x)

    # z branch: PixelNorm -> Linear -> LeakyReLU(0.01)
    z = pixel_norm(z_ref[...])
    h_z = lrelu(jnp.dot(z, zw_ref[...],
                        preferred_element_type=jnp.float32) + zb_ref[...], 0.01)
    # c branch: Linear -> LeakyReLU(0.01)
    h_c = lrelu(jnp.dot(c_ref[...], cw_ref[...],
                        preferred_element_type=jnp.float32) + cb_ref[...], 0.01)

    # First mapping layer consumes concat([h_z, h_c]); expressed as a split
    # matmul (mathematically identical, avoids an in-kernel concatenate).
    d = h_z.shape[1]
    w0 = map_refs[0][...]
    b0 = map_refs[1][...]
    h = (jnp.dot(h_z, w0[:d, :], preferred_element_type=jnp.float32) +
         jnp.dot(h_c, w0[d:, :], preferred_element_type=jnp.float32) + b0)
    h = pixel_norm(lrelu(h, 0.2))

    # Remaining mapping layers, static Python loop — all in VMEM/vregs.
    for i in range(1, n_map_layers):
        W = map_refs[2 * i][...]
        b = map_refs[2 * i + 1][...]
        h = jnp.dot(h, W, preferred_element_type=jnp.float32) + b
        h = pixel_norm(lrelu(h, 0.2))

    w_out_ref[...] = h
    # AdaIN affine: style = Linear(w) -> (B, 2*C)
    style_out_ref[...] = (jnp.dot(h, aw_ref[...],
                                  preferred_element_type=jnp.float32)
                          + ab_ref[...])


def mapping_forward(params, z, c):
    """Returns (w, style_flat): (B, z_dim) and (B, 2*C)."""
    B, z_dim = z.shape
    two_c = params['adain_w'].shape[1]
    n_layers = len(params['mapping'])

    inputs = [z, c,
              params['z_mpl_w'], params['z_mpl_b'].reshape(1, -1),
              params['c_mpl_w'], params['c_mpl_b'].reshape(1, -1)]
    for (W, b) in params['mapping']:
        inputs += [W, b.reshape(1, -1)]
    inputs += [params['adain_w'], params['adain_b'].reshape(1, -1)]

    kernel = functools.partial(_mapping_kernel, n_map_layers=n_layers)
    w_out, style_out = pl.pallas_call(
        kernel,
        out_shape=(jax.ShapeDtypeStruct((B, z_dim), jnp.float32),
                   jax.ShapeDtypeStruct((B, two_c), jnp.float32)),
    )(*inputs)
    return w_out, style_out


# --------------------------------------------------------------------------
# Synthesis: conv3x3 (+noise, InstanceNorm, AdaIN, LReLU) + to_rgb, fused
# --------------------------------------------------------------------------

def _synth_kernel(patch_ref, w_ref, b_ref, noise_ref, nscale_ref, style_ref,
                  rgbw_ref, rgbb_ref, o_ref, *, B, HW, C):
    # conv3x3 as ONE im2col matmul with batch folded into M:
    #   (B*HW, 9*Cin) bf16 @ (9*Cin, C) bf16 -> f32
    y = jnp.dot(patch_ref[...], w_ref[...], preferred_element_type=jnp.float32)
    y = y + b_ref[...]
    # x + noise_scale * noise  (same noise for every channel)
    y = y + noise_ref[...] * nscale_ref[...]            # (B*HW,1)*(1,C)

    # InstanceNorm2d(affine=False, eps=1e-5): per-(sample, channel) over H*W
    y3 = y.reshape(B, HW, C)
    mu = jnp.mean(y3, axis=1, keepdims=True)
    var = jnp.mean((y3 - mu) ** 2, axis=1, keepdims=True)
    xn = (y3 - mu) / jnp.sqrt(var + 1e-5)

    # AdaIN: ys * x_norm + yb  (style_flat[:, :C] = ys, [:, C:] = yb)
    st = style_ref[...]
    ys = st[:, :C].reshape(B, 1, C)
    yb = st[:, C:].reshape(B, 1, C)
    feat = ys * xn + yb
    feat = jnp.where(feat >= 0.0, feat, 0.2 * feat)     # LeakyReLU(0.2)

    # Fused to_rgb: 1x1 conv as (B*HW, C) @ (C, 3) + tanh
    rgb = jnp.dot(feat.reshape(B * HW, C).astype(jnp.bfloat16), rgbw_ref[...],
                  preferred_element_type=jnp.float32) + rgbb_ref[...]
    o_ref[...] = jnp.tanh(rgb).reshape(B, HW, 3)


def synthesis_forward(params, x_nhwc, noise, style_flat):
    """x_nhwc: (B,H,W,Cin); noise: (B,H,W); style_flat: (B, 2*Cout).
       Returns RGB (B, H*W, 3) float32."""
    B, H, W, Cin = x_nhwc.shape
    Cout = params['conv_w'].shape[0]
    HW = H * W

    # im2col glue (zero padding = Conv2d(padding=1)); cast to bf16 for DMA/MXU.
    xp = jnp.pad(x_nhwc, ((0, 0), (1, 1), (1, 1), (0, 0)))
    cols = [xp[:, dy:dy + H, dx:dx + W, :] for dy in range(3) for dx in range(3)]
    patches = jnp.concatenate(cols, axis=-1).reshape(B * HW, 9 * Cin)
    patches = patches.astype(jnp.bfloat16)
    # (Cout,Cin,ky,kx) -> (ky,kx,Cin,Cout) -> (9*Cin, Cout), matching patch order
    wmat = jnp.transpose(params['conv_w'], (2, 3, 1, 0)).reshape(9 * Cin, Cout)
    wmat = wmat.astype(jnp.bfloat16)
    rgb_w = params['rgb_w'].astype(jnp.bfloat16)

    kernel = functools.partial(_synth_kernel, B=B, HW=HW, C=Cout)
    return pl.pallas_call(
        kernel,
        out_shape=jax.ShapeDtypeStruct((B, HW, 3), jnp.float32),
        compiler_params=pltpu.CompilerParams(
            vmem_limit_bytes=32 * 1024 * 1024),   # fits v7x's 64 MiB VMEM/TC
    )(patches, wmat, params['conv_b'].reshape(1, Cout),
      noise.reshape(B * HW, 1), params['noise_scale'].reshape(1, Cout),
      style_flat, rgb_w, params['rgb_b'].reshape(1, 3))


# --------------------------------------------------------------------------
# Parameters (deterministic synthetic init, shapes follow the torch module)
# --------------------------------------------------------------------------

def init_generator_params(key, z_dim, c_dim):
    C = 512  # Synthesis hard-codes 512 channels, 4x4 const
    ks = jax.random.split(key, 20)

    def lin(k, fan_in, fan_out, scale=0.05):
        kw, kb = jax.random.split(k)
        w = jax.random.normal(kw, (fan_in, fan_out), jnp.float32) * scale
        b = jax.random.normal(kb, (fan_out,), jnp.float32) * 0.01
        return w, b

    p = {}
    # Mapping
    p['z_mpl_w'], p['z_mpl_b'] = lin(ks[0], z_dim, z_dim)
    p['c_mpl_w'], p['c_mpl_b'] = lin(ks[1], c_dim, z_dim)
    mapping = [lin(ks[2], 2 * z_dim, z_dim)]
    for i in range(8):
        mapping.append(lin(ks[3 + i], z_dim, z_dim))
    p['mapping'] = mapping
    # Synthesis (only blocks[0].const and blocks[1] + to_rgb are used in forward)
    p['const'] = jax.random.normal(ks[11], (1, C, 4, 4), jnp.float32)
    p['conv_w'] = jax.random.normal(ks[12], (C, C, 3, 3), jnp.float32) * 0.02
    p['conv_b'] = jax.random.normal(ks[13], (C,), jnp.float32) * 0.01
    p['adain_w'], p['adain_b'] = lin(ks[14], z_dim, 2 * C)
    p['noise_scale'] = jnp.full((C,), 0.1, jnp.float32)
    p['rgb_w'] = jax.random.normal(ks[15], (C, 3), jnp.float32) * 0.02
    p['rgb_b'] = jax.random.normal(ks[16], (3,), jnp.float32) * 0.01
    return p


# --------------------------------------------------------------------------
# Generator forward
# --------------------------------------------------------------------------

def generator_forward(params, z, c, noise_key):
    # ---- Mapping network (one fused Pallas kernel) ----
    w, style_flat = mapping_forward(params, z, c)      # (B, z_dim), (B, 2*C)

    # ---- Synthesis ----
    B = z.shape[0]
    const = params['const']                            # (1, 512, 4, 4) NCHW
    x_nchw = jnp.broadcast_to(const, (B,) + const.shape[1:])
    x_nhwc = jnp.transpose(x_nchw, (0, 2, 3, 1))       # (B, 4, 4, 512)
    H, Wd = x_nhwc.shape[1], x_nhwc.shape[2]

    # per-sample single-channel noise, torch.randn equivalent
    noise = jax.random.normal(noise_key, (B, H, Wd), dtype=jnp.float32)

    rgb = synthesis_forward(params, x_nhwc, noise, style_flat)  # (B, HW, 3)
    img = rgb.reshape(B, H, Wd, 3).transpose(0, 3, 1, 2)        # NCHW
    return img, w


# --------------------------------------------------------------------------

if __name__ == "__main__":
    z_dim, c_dim, B = 32, 8, 2
    key = jax.random.PRNGKey(0)
    k_params, k_z, k_c, k_noise = jax.random.split(key, 4)

    params = init_generator_params(k_params, z_dim, c_dim)
    z = jax.random.normal(k_z, (B, z_dim), jnp.float32)
    c = jax.random.normal(k_c, (B, c_dim), jnp.float32)

    img, w = generator_forward(params, z, c, k_noise)
    jax.block_until_ready((img, w))

    assert img.shape == (B, 3, 4, 4), img.shape
    assert w.shape == (B, z_dim), w.shape
    assert bool(jnp.all(jnp.isfinite(img))) and bool(jnp.all(jnp.isfinite(w)))
    print("KERNEL_OK")
</pallas_src>

<mosaic_0001>
module attributes {stable_mosaic.version = 11 : i64} {
  func.func @_mapping_kernel(%arg0: memref<2x32xf32, #tpu.memory_space<vmem>>, %arg1: memref<2x8xf32, #tpu.memory_space<vmem>>, %arg2: memref<32x32xf32, #tpu.memory_space<vmem>>, %arg3: memref<1x32xf32, #tpu.memory_space<vmem>>, %arg4: memref<8x32xf32, #tpu.memory_space<vmem>>, %arg5: memref<1x32xf32, #tpu.memory_space<vmem>>, %arg6: memref<64x32xf32, #tpu.memory_space<vmem>>, %arg7: memref<1x32xf32, #tpu.memory_space<vmem>>, %arg8: memref<32x32xf32, #tpu.memory_space<vmem>>, %arg9: memref<1x32xf32, #tpu.memory_space<vmem>>, %arg10: memref<32x32xf32, #tpu.memory_space<vmem>>, %arg11: memref<1x32xf32, #tpu.memory_space<vmem>>, %arg12: memref<32x32xf32, #tpu.memory_space<vmem>>, %arg13: memref<1x32xf32, #tpu.memory_space<vmem>>, %arg14: memref<32x32xf32, #tpu.memory_space<vmem>>, %arg15: memref<1x32xf32, #tpu.memory_space<vmem>>, %arg16: memref<32x32xf32, #tpu.memory_space<vmem>>, %arg17: memref<1x32xf32, #tpu.memory_space<vmem>>, %arg18: memref<32x32xf32, #tpu.memory_space<vmem>>, %arg19: memref<1x32xf32, #tpu.memory_space<vmem>>, %arg20: memref<32x32xf32, #tpu.memory_space<vmem>>, %arg21: memref<1x32xf32, #tpu.memory_space<vmem>>, %arg22: memref<32x32xf32, #tpu.memory_space<vmem>>, %arg23: memref<1x32xf32, #tpu.memory_space<vmem>>, %arg24: memref<32x1024xf32, #tpu.memory_space<vmem>>, %arg25: memref<1x1024xf32, #tpu.memory_space<vmem>>, %arg26: memref<2x32xf32, #tpu.memory_space<vmem>>, %arg27: memref<2x1024xf32, #tpu.memory_space<vmem>>) attributes {dimension_semantics = [], scalar_prefetch = 0 : i64, scratch_operands = 0 : i64, tpu.core_type = #tpu.core_type<tc>} {
    %c0 = arith.constant 0 : index
    %c0_0 = arith.constant 0 : index
    %0 = vector.load %arg0[%c0, %c0_0] : memref<2x32xf32, #tpu.memory_space<vmem>>, vector<2x32xf32>
    %1 = arith.mulf %0, %0 : vector<2x32xf32>
    %cst = arith.constant dense<0.000000e+00> : vector<2xf32>
    %2 = vector.multi_reduction <add>, %1, %cst [1] : vector<2x32xf32> to vector<2xf32>
    %3 = vector.shape_cast %2 : vector<2xf32> to vector<2x1xf32>
    %cst_1 = arith.constant 3.200000e+01 : f32
    %4 = vector.broadcast %cst_1 : f32 to vector<2x1xf32>
    %5 = arith.divf %3, %4 : vector<2x1xf32>
    %cst_2 = arith.constant 9.99999993E-9 : f32
    %6 = vector.broadcast %cst_2 : f32 to vector<2x1xf32>
    %7 = arith.addf %5, %6 : vector<2x1xf32>
    %8 = math.sqrt %7 : vector<2x1xf32>
    %9 = vector.broadcast %8 : vector<2x1xf32> to vector<2x32xf32>
    %10 = arith.divf %0, %9 : vector<2x32xf32>
    %c0_3 = arith.constant 0 : index
    %c0_4 = arith.constant 0 : index
    %11 = vector.load %arg2[%c0_3, %c0_4] : memref<32x32xf32, #tpu.memory_space<vmem>>, vector<32x32xf32>
    %cst_5 = arith.constant dense<0.000000e+00> : vector<2x32xf32>
    %12 = tpu.matmul %10, %11, %cst_5 {dimension_numbers = #tpu.dot_dimension_numbers<[1], [0], [0], [1], [0, 0, 1, 1], [], []>} : vector<2x32xf32>, vector<32x32xf32>, vector<2x32xf32> -> vector<2x32xf32>
    %c0_6 = arith.constant 0 : index
    %c0_7 = arith.constant 0 : index
    %13 = vector.load %arg3[%c0_6, %c0_7] : memref<1x32xf32, #tpu.memory_space<vmem>>, vector<1x32xf32>
    %14 = vector.broadcast %13 : vector<1x32xf32> to vector<2x32xf32>
    %15 = arith.addf %12, %14 : vector<2x32xf32>
    %cst_8 = arith.constant 0.000000e+00 : f32
    %16 = vector.broadcast %cst_8 : f32 to vector<2x32xf32>
    %17 = arith.cmpf oge, %15, %16 : vector<2x32xf32>
    %cst_9 = arith.constant 0.00999999977 : f32
    %18 = vector.broadcast %cst_9 : f32 to vector<2x32xf32>
    %19 = arith.mulf %18, %15 : vector<2x32xf32>
    %20 = arith.select %17, %15, %19 : vector<2x32xi1>, vector<2x32xf32>
    %c0_10 = arith.constant 0 : index
    %c0_11 = arith.constant 0 : index
    %21 = vector.load %arg1[%c0_10, %c0_11] : memref<2x8xf32, #tpu.memory_space<vmem>>, vector<2x8xf32>
    %c0_12 = arith.constant 0 : index
    %c0_13 = arith.constant 0 : index
    %22 = vector.load %arg4[%c0_12, %c0_13] : memref<8x32xf32, #tpu.memory_space<vmem>>, vector<8x32xf32>
    %cst_14 = arith.constant dense<0.000000e+00> : vector<2x32xf32>
    %23 = tpu.matmul %21, %22, %cst_14 {dimension_numbers = #tpu.dot_dimension_numbers<[1], [0], [0], [1], [0, 0, 1, 1], [], []>} : vector<2x8xf32>, vector<8x32xf32>, vector<2x32xf32> -> vector<2x32xf32>
    %c0_15 = arith.constant 0 : index
    %c0_16 = arith.constant 0 : index
    %24 = vector.load %arg5[%c0_15, %c0_16] : memref<1x32xf32, #tpu.memory_space<vmem>>, vector<1x32xf32>
    %25 = vector.broadcast %24 : vector<1x32xf32> to vector<2x32xf32>
    %26 = arith.addf %23, %25 : vector<2x32xf32>
    %cst_17 = arith.constant 0.000000e+00 : f32
    %27 = vector.broadcast %cst_17 : f32 to vector<2x32xf32>
    %28 = arith.cmpf oge, %26, %27 : vector<2x32xf32>
    %cst_18 = arith.constant 0.00999999977 : f32
    %29 = vector.broadcast %cst_18 : f32 to vector<2x32xf32>
    %30 = arith.mulf %29, %26 : vector<2x32xf32>
    %31 = arith.select %28, %26, %30 : vector<2x32xi1>, vector<2x32xf32>
    %c0_19 = arith.constant 0 : index
    %c0_20 = arith.constant 0 : index
    %32 = vector.load %arg6[%c0_19, %c0_20] : memref<64x32xf32, #tpu.memory_space<vmem>>, vector<64x32xf32>
    %c0_21 = arith.constant 0 : index
    %c0_22 = arith.constant 0 : index
    %33 = vector.load %arg7[%c0_21, %c0_22] : memref<1x32xf32, #tpu.memory_space<vmem>>, vector<1x32xf32>
    %34 = vector.extract_strided_slice %32 {offsets = [0, 0], sizes = [32, 32], strides = [1, 1]} : vector<64x32xf32> to vector<32x32xf32>
    %cst_23 = arith.constant dense<0.000000e+00> : vector<2x32xf32>
    %35 = tpu.matmul %20, %34, %cst_23 {dimension_numbers = #tpu.dot_dimension_numbers<[1], [0], [0], [1], [0, 0, 1, 1], [], []>} : vector<2x32xf32>, vector<32x32xf32>, vector<2x32xf32> -> vector<2x32xf32>
    %36 = vector.extract_strided_slice %32 {offsets = [32, 0], sizes = [32, 32], strides = [1, 1]} : vector<64x32xf32> to vector<32x32xf32>
    %cst_24 = arith.constant dense<0.000000e+00> : vector<2x32xf32>
    %37 = tpu.matmul %31, %36, %cst_24 {dimension_numbers = #tpu.dot_dimension_numbers<[1], [0], [0], [1], [0, 0, 1, 1], [], []>} : vector<2x32xf32>, vector<32x32xf32>, vector<2x32xf32> -> vector<2x32xf32>
    %38 = arith.addf %35, %37 : vector<2x32xf32>
    %39 = vector.broadcast %33 : vector<1x32xf32> to vector<2x32xf32>
    %40 = arith.addf %38, %39 : vector<2x32xf32>
    %cst_25 = arith.constant 0.000000e+00 : f32
    %41 = vector.broadcast %cst_25 : f32 to vector<2x32xf32>
    %42 = arith.cmpf oge, %40, %41 : vector<2x32xf32>
    %cst_26 = arith.constant 2.000000e-01 : f32
    %43 = vector.broadcast %cst_26 : f32 to vector<2x32xf32>
    %44 = arith.mulf %43, %40 : vector<2x32xf32>
    %45 = arith.select %42, %40, %44 : vector<2x32xi1>, vector<2x32xf32>
    %46 = arith.mulf %45, %45 : vector<2x32xf32>
    %cst_27 = arith.constant dense<0.000000e+00> : vector<2xf32>
    %47 = vector.multi_reduction <add>, %46, %cst_27 [1] : vector<2x32xf32> to vector<2xf32>
    %48 = vector.shape_cast %47 : vector<2xf32> to vector<2x1xf32>
    %cst_28 = arith.constant 3.200000e+01 : f32
    %49 = vector.broadcast %cst_28 : f32 to vector<2x1xf32>
    %50 = arith.divf %48, %49 : vector<2x1xf32>
    %cst_29 = arith.constant 9.99999993E-9 : f32
    %51 = vector.broadcast %cst_29 : f32 to vector<2x1xf32>
    %52 = arith.addf %50, %51 : vector<2x1xf32>
    %53 = math.sqrt %52 : vector<2x1xf32>
    %54 = vector.broadcast %53 : vector<2x1xf32> to vector<2x32xf32>
    %55 = arith.divf %45, %54 : vector<2x32xf32>
    %c0_30 = arith.constant 0 : index
    %c0_31 = arith.constant 0 : index
    %56 = vector.load %arg8[%c0_30, %c0_31] : memref<32x32xf32, #tpu.memory_space<vmem>>, vector<32x32xf32>
    %c0_32 = arith.constant 0 : index
    %c0_33 = arith.constant 0 : index
    %57 = vector.load %arg9[%c0_32, %c0_33] : memref<1x32xf32, #tpu.memory_space<vmem>>, vector<1x32xf32>
    %cst_34 = arith.constant dense<0.000000e+00> : vector<2x32xf32>
    %58 = tpu.matmul %55, %56, %cst_34 {dimension_numbers = #tpu.dot_dimension_numbers<[1], [0], [0], [1], [0, 0, 1, 1], [], []>} : vector<2x32xf32>, vector<32x32xf32>, vector<2x32xf32> -> vector<2x32xf32>
    %59 = vector.broadcast %57 : vector<1x32xf32> to vector<2x32xf32>
    %60 = arith.addf %58, %59 : vector<2x32xf32>
    %cst_35 = arith.constant 0.000000e+00 : f32
    %61 = vector.broadcast %cst_35 : f32 to vector<2x32xf32>
    %62 = arith.cmpf oge, %60, %61 : vector<2x32xf32>
    %cst_36 = arith.constant 2.000000e-01 : f32
    %63 = vector.broadcast %cst_36 : f32 to vector<2x32xf32>
    %64 = arith.mulf %63, %60 : vector<2x32xf32>
    %65 = arith.select %62, %60, %64 : vector<2x32xi1>, vector<2x32xf32>
    %66 = arith.mulf %65, %65 : vector<2x32xf32>
    %cst_37 = arith.constant dense<0.000000e+00> : vector<2xf32>
    %67 = vector.multi_reduction <add>, %66, %cst_37 [1] : vector<2x32xf32> to vector<2xf32>
    %68 = vector.shape_cast %67 : vector<2xf32> to vector<2x1xf32>
    %cst_38 = arith.constant 3.200000e+01 : f32
    %69 = vector.broadcast %cst_38 : f32 to vector<2x1xf32>
    %70 = arith.divf %68, %69 : vector<2x1xf32>
    %cst_39 = arith.constant 9.99999993E-9 : f32
    %71 = vector.broadcast %cst_39 : f32 to vector<2x1xf32>
    %72 = arith.addf %70, %71 : vector<2x1xf32>
    %73 = math.sqrt %72 : vector<2x1xf32>
    %74 = vector.broadcast %73 : vector<2x1xf32> to vector<2x32xf32>
    %75 = arith.divf %65, %74 : vector<2x32xf32>
    %c0_40 = arith.constant 0 : index
    %c0_41 = arith.constant 0 : index
    %76 = vector.load %arg10[%c0_40, %c0_41] : memref<32x32xf32, #tpu.memory_space<vmem>>, vector<32x32xf32>
    %c0_42 = arith.constant 0 : index
    %c0_43 = arith.constant 0 : index
    %77 = vector.load %arg11[%c0_42, %c0_43] : memref<1x32xf32, #tpu.memory_space<vmem>>, vector<1x32xf32>
    %cst_44 = arith.constant dense<0.000000e+00> : vector<2x32xf32>
    %78 = tpu.matmul %75, %76, %cst_44 {dimension_numbers = #tpu.dot_dimension_numbers<[1], [0], [0], [1], [0, 0, 1, 1], [], []>} : vector<2x32xf32>, vector<32x32xf32>, vector<2x32xf32> -> vector<2x32xf32>
    %79 = vector.broadcast %77 : vector<1x32xf32> to vector<2x32xf32>
    %80 = arith.addf %78, %79 : vector<2x32xf32>
    %cst_45 = arith.constant 0.000000e+00 : f32
    %81 = vector.broadcast %cst_45 : f32 to vector<2x32xf32>
    %82 = arith.cmpf oge, %80, %81 : vector<2x32xf32>
    %cst_46 = arith.constant 2.000000e-01 : f32
    %83 = vector.broadcast %cst_46 : f32 to vector<2x32xf32>
    %84 = arith.mulf %83, %80 : vector<2x32xf32>
    %85 = arith.select %82, %80, %84 : vector<2x32xi1>, vector<2x32xf32>
    %86 = arith.mulf %85, %85 : vector<2x32xf32>
    %cst_47 = arith.constant dense<0.000000e+00> : vector<2xf32>
    %87 = vector.multi_reduction <add>, %86, %cst_47 [1] : vector<2x32xf32> to vector<2xf32>
    %88 = vector.shape_cast %87 : vector<2xf32> to vector<2x1xf32>
    %cst_48 = arith.constant 3.200000e+01 : f32
    %89 = vector.broadcast %cst_48 : f32 to vector<2x1xf32>
    %90 = arith.divf %88, %89 : vector<2x1xf32>
    %cst_49 = arith.constant 9.99999993E-9 : f32
    %91 = vector.broadcast %cst_49 : f32 to vector<2x1xf32>
    %92 = arith.addf %90, %91 : vector<2x1xf32>
    %93 = math.sqrt %92 : vector<2x1xf32>
    %94 = vector.broadcast %93 : vector<2x1xf32> to vector<2x32xf32>
    %95 = arith.divf %85, %94 : vector<2x32xf32>
    %c0_50 = arith.constant 0 : index
    %c0_51 = arith.constant 0 : index
    %96 = vector.load %arg12[%c0_50, %c0_51] : memref<32x32xf32, #tpu.memory_space<vmem>>, vector<32x32xf32>
    %c0_52 = arith.constant 0 : index
    %c0_53 = arith.constant 0 : index
    %97 = vector.load %arg13[%c0_52, %c0_53] : memref<1x32xf32, #tpu.memory_space<vmem>>, vector<1x32xf32>
    %cst_54 = arith.constant dense<0.000000e+00> : vector<2x32xf32>
    %98 = tpu.matmul %95, %96, %cst_54 {dimension_numbers = #tpu.dot_dimension_numbers<[1], [0], [0], [1], [0, 0, 1, 1], [], []>} : vector<2x32xf32>, vector<32x32xf32>, vector<2x32xf32> -> vector<2x32xf32>
    %99 = vector.broadcast %97 : vector<1x32xf32> to vector<2x32xf32>
    %100 = arith.addf %98, %99 : vector<2x32xf32>
    %cst_55 = arith.constant 0.000000e+00 : f32
    %101 = vector.broadcast %cst_55 : f32 to vector<2x32xf32>
    %102 = arith.cmpf oge, %100, %101 : vector<2x32xf32>
    %cst_56 = arith.constant 2.000000e-01 : f32
    %103 = vector.broadcast %cst_56 : f32 to vector<2x32xf32>
    %104 = arith.mulf %103, %100 : vector<2x32xf32>
    %105 = arith.select %102, %100, %104 : vector<2x32xi1>, vector<2x32xf32>
    %106 = arith.mulf %105, %105 : vector<2x32xf32>
    %cst_57 = arith.constant dense<0.000000e+00> : vector<2xf32>
    %107 = vector.multi_reduction <add>, %106, %cst_57 [1] : vector<2x32xf32> to vector<2xf32>
    %108 = vector.shape_cast %107 : vector<2xf32> to vector<2x1xf32>
    %cst_58 = arith.constant 3.200000e+01 : f32
    %109 = vector.broadcast %cst_58 : f32 to vector<2x1xf32>
    %110 = arith.divf %108, %109 : vector<2x1xf32>
    %cst_59 = arith.constant 9.99999993E-9 : f32
    %111 = vector.broadcast %cst_59 : f32 to vector<2x1xf32>
    %112 = arith.addf %110, %111 : vector<2x1xf32>
    %113 = math.sqrt %112 : vector<2x1xf32>
    %114 = vector.broadcast %113 : vector<2x1xf32> to vector<2x32xf32>
    %115 = arith.divf %105, %114 : vector<2x32xf32>
    %c0_60 = arith.constant 0 : index
    %c0_61 = arith.constant 0 : index
    %116 = vector.load %arg14[%c0_60, %c0_61] : memref<32x32xf32, #tpu.memory_space<vmem>>, vector<32x32xf32>
    %c0_62 = arith.constant 0 : index
    %c0_63 = arith.constant 0 : index
    %117 = vector.load %arg15[%c0_62, %c0_63] : memref<1x32xf32, #tpu.memory_space<vmem>>, vector<1x32xf32>
    %cst_64 = arith.constant dense<0.000000e+00> : vector<2x32xf32>
    %118 = tpu.matmul %115, %116, %cst_64 {dimension_numbers = #tpu.dot_dimension_numbers<[1], [0], [0], [1], [0, 0, 1, 1], [], []>} : vector<2x32xf32>, vector<32x32xf32>, vector<2x32xf32> -> vector<2x32xf32>
    %119 = vector.broadcast %117 : vector<1x32xf32> to vector<2x32xf32>
    %120 = arith.addf %118, %119 : vector<2x32xf32>
    %cst_65 = arith.constant 0.000000e+00 : f32
    %121 = vector.broadcast %cst_65 : f32 to vector<2x32xf32>
    %122 = arith.cmpf oge, %120, %121 : vector<2x32xf32>
    %cst_66 = arith.constant 2.000000e-01 : f32
    %123 = vector.broadcast %cst_66 : f32 to vector<2x32xf32>
    %124 = arith.mulf %123, %120 : vector<2x32xf32>
    %125 = arith.select %122, %120, %124 : vector<2x32xi1>, vector<2x32xf32>
    %126 = arith.mulf %125, %125 : vector<2x32xf32>
    %cst_67 = arith.constant dense<0.000000e+00> : vector<2xf32>
    %127 = vector.multi_reduction <add>, %126, %cst_67 [1] : vector<2x32xf32> to vector<2xf32>
    %128 = vector.shape_cast %127 : vector<2xf32> to vector<2x1xf32>
    %cst_68 = arith.constant 3.200000e+01 : f32
    %129 = vector.broadcast %cst_68 : f32 to vector<2x1xf32>
    %130 = arith.divf %128, %129 : vector<2x1xf32>
    %cst_69 = arith.constant 9.99999993E-9 : f32
    %131 = vector.broadcast %cst_69 : f32 to vector<2x1xf32>
    %132 = arith.addf %130, %131 : vector<2x1xf32>
    %133 = math.sqrt %132 : vector<2x1xf32>
    %134 = vector.broadcast %133 : vector<2x1xf32> to vector<2x32xf32>
    %135 = arith.divf %125, %134 : vector<2x32xf32>
    %c0_70 = arith.constant 0 : index
    %c0_71 = arith.constant 0 : index
    %136 = vector.load %arg16[%c0_70, %c0_71] : memref<32x32xf32, #tpu.memory_space<vmem>>, vector<32x32xf32>
    %c0_72 = arith.constant 0 : index
    %c0_73 = arith.constant 0 : index
    %137 = vector.load %arg17[%c0_72, %c0_73] : memref<1x32xf32, #tpu.memory_space<vmem>>, vector<1x32xf32>
    %cst_74 = arith.constant dense<0.000000e+00> : vector<2x32xf32>
    %138 = tpu.matmul %135, %136, %cst_74 {dimension_numbers = #tpu.dot_dimension_numbers<[1], [0], [0], [1], [0, 0, 1, 1], [], []>} : vector<2x32xf32>, vector<32x32xf32>, vector<2x32xf32> -> vector<2x32xf32>
    %139 = vector.broadcast %137 : vector<1x32xf32> to vector<2x32xf32>
    %140 = arith.addf %138, %139 : vector<2x32xf32>
    %cst_75 = arith.constant 0.000000e+00 : f32
    %141 = vector.broadcast %cst_75 : f32 to vector<2x32xf32>
    %142 = arith.cmpf oge, %140, %141 : vector<2x32xf32>
    %cst_76 = arith.constant 2.000000e-01 : f32
    %143 = vector.broadcast %cst_76 : f32 to vector<2x32xf32>
    %144 = arith.mulf %143, %140 : vector<2x32xf32>
    %145 = arith.select %142, %140, %144 : vector<2x32xi1>, vector<2x32xf32>
    %146 = arith.mulf %145, %145 : vector<2x32xf32>
    %cst_77 = arith.constant dense<0.000000e+00> : vector<2xf32>
    %147 = vector.multi_reduction <add>, %146, %cst_77 [1] : vector<2x32xf32> to vector<2xf32>
    %148 = vector.shape_cast %147 : vector<2xf32> to vector<2x1xf32>
    %cst_78 = arith.constant 3.200000e+01 : f32
    %149 = vector.broadcast %cst_78 : f32 to vector<2x1xf32>
    %150 = arith.divf %148, %149 : vector<2x1xf32>
    %cst_79 = arith.constant 9.99999993E-9 : f32
    %151 = vector.broadcast %cst_79 : f32 to vector<2x1xf32>
    %152 = arith.addf %150, %151 : vector<2x1xf32>
    %153 = math.sqrt %152 : vector<2x1xf32>
    %154 = vector.broadcast %153 : vector<2x1xf32> to vector<2x32xf32>
    %155 = arith.divf %145, %154 : vector<2x32xf32>
    %c0_80 = arith.constant 0 : index
    %c0_81 = arith.constant 0 : index
    %156 = vector.load %arg18[%c0_80, %c0_81] : memref<32x32xf32, #tpu.memory_space<vmem>>, vector<32x32xf32>
    %c0_82 = arith.constant 0 : index
    %c0_83 = arith.constant 0 : index
    %157 = vector.load %arg19[%c0_82, %c0_83] : memref<1x32xf32, #tpu.memory_space<vmem>>, vector<1x32xf32>
    %cst_84 = arith.constant dense<0.000000e+00> : vector<2x32xf32>
    %158 = tpu.matmul %155, %156, %cst_84 {dimension_numbers = #tpu.dot_dimension_numbers<[1], [0], [0], [1], [0, 0, 1, 1], [], []>} : vector<2x32xf32>, vector<32x32xf32>, vector<2x32xf32> -> vector<2x32xf32>
    %159 = vector.broadcast %157 : vector<1x32xf32> to vector<2x32xf32>
    %160 = arith.addf %158, %159 : vector<2x32xf32>
    %cst_85 = arith.constant 0.000000e+00 : f32
    %161 = vector.broadcast %cst_85 : f32 to vector<2x32xf32>
    %162 = arith.cmpf oge, %160, %161 : vector<2x32xf32>
    %cst_86 = arith.constant 2.000000e-01 : f32
    %163 = vector.broadcast %cst_86 : f32 to vector<2x32xf32>
    %164 = arith.mulf %163, %160 : vector<2x32xf32>
    %165 = arith.select %162, %160, %164 : vector<2x32xi1>, vector<2x32xf32>
    %166 = arith.mulf %165, %165 : vector<2x32xf32>
    %cst_87 = arith.constant dense<0.000000e+00> : vector<2xf32>
    %167 = vector.multi_reduction <add>, %166, %cst_87 [1] : vector<2x32xf32> to vector<2xf32>
    %168 = vector.shape_cast %167 : vector<2xf32> to vector<2x1xf32>
    %cst_88 = arith.constant 3.200000e+01 : f32
    %169 = vector.broadcast %cst_88 : f32 to vector<2x1xf32>
    %170 = arith.divf %168, %169 : vector<2x1xf32>
    %cst_89 = arith.constant 9.99999993E-9 : f32
    %171 = vector.broadcast %cst_89 : f32 to vector<2x1xf32>
    %172 = arith.addf %170, %171 : vector<2x1xf32>
    %173 = math.sqrt %172 : vector<2x1xf32>
    %174 = vector.broadcast %173 : vector<2x1xf32> to vector<2x32xf32>
    %175 = arith.divf %165, %174 : vector<2x32xf32>
    %c0_90 = arith.constant 0 : index
    %c0_91 = arith.constant 0 : index
    %176 = vector.load %arg20[%c0_90, %c0_91] : memref<32x32xf32, #tpu.memory_space<vmem>>, vector<32x32xf32>
    %c0_92 = arith.constant 0 : index
    %c0_93 = arith.constant 0 : index
    %177 = vector.load %arg21[%c0_92, %c0_93] : memref<1x32xf32, #tpu.memory_space<vmem>>, vector<1x32xf32>
    %cst_94 = arith.constant dense<0.000000e+00> : vector<2x32xf32>
    %178 = tpu.matmul %175, %176, %cst_94 {dimension_numbers = #tpu.dot_dimension_numbers<[1], [0], [0], [1], [0, 0, 1, 1], [], []>} : vector<2x32xf32>, vector<32x32xf32>, vector<2x32xf32> -> vector<2x32xf32>
    %179 = vector.broadcast %177 : vector<1x32xf32> to vector<2x32xf32>
    %180 = arith.addf %178, %179 : vector<2x32xf32>
    %cst_95 = arith.constant 0.000000e+00 : f32
    %181 = vector.broadcast %cst_95 : f32 to vector<2x32xf32>
    %182 = arith.cmpf oge, %180, %181 : vector<2x32xf32>
    %cst_96 = arith.constant 2.000000e-01 : f32
    %183 = vector.broadcast %cst_96 : f32 to vector<2x32xf32>
    %184 = arith.mulf %183, %180 : vector<2x32xf32>
    %185 = arith.select %182, %180, %184 : vector<2x32xi1>, vector<2x32xf32>
    %186 = arith.mulf %185, %185 : vector<2x32xf32>
    %cst_97 = arith.constant dense<0.000000e+00> : vector<2xf32>
    %187 = vector.multi_reduction <add>, %186, %cst_97 [1] : vector<2x32xf32> to vector<2xf32>
    %188 = vector.shape_cast %187 : vector<2xf32> to vector<2x1xf32>
    %cst_98 = arith.constant 3.200000e+01 : f32
    %189 = vector.broadcast %cst_98 : f32 to vector<2x1xf32>
    %190 = arith.divf %188, %189 : vector<2x1xf32>
    %cst_99 = arith.constant 9.99999993E-9 : f32
    %191 = vector.broadcast %cst_99 : f32 to vector<2x1xf32>
    %192 = arith.addf %190, %191 : vector<2x1xf32>
    %193 = math.sqrt %192 : vector<2x1xf32>
    %194 = vector.broadcast %193 : vector<2x1xf32> to vector<2x32xf32>
    %195 = arith.divf %185, %194 : vector<2x32xf32>
    %c0_100 = arith.constant 0 : index
    %c0_101 = arith.constant 0 : index
    %196 = vector.load %arg22[%c0_100, %c0_101] : memref<32x32xf32, #tpu.memory_space<vmem>>, vector<32x32xf32>
    %c0_102 = arith.constant 0 : index
    %c0_103 = arith.constant 0 : index
    %197 = vector.load %arg23[%c0_102, %c0_103] : memref<1x32xf32, #tpu.memory_space<vmem>>, vector<1x32xf32>
    %cst_104 = arith.constant dense<0.000000e+00> : vector<2x32xf32>
    %198 = tpu.matmul %195, %196, %cst_104 {dimension_numbers = #tpu.dot_dimension_numbers<[1], [0], [0], [1], [0, 0, 1, 1], [], []>} : vector<2x32xf32>, vector<32x32xf32>, vector<2x32xf32> -> vector<2x32xf32>
    %199 = vector.broadcast %197 : vector<1x32xf32> to vector<2x32xf32>
    %200 = arith.addf %198, %199 : vector<2x32xf32>
    %cst_105 = arith.constant 0.000000e+00 : f32
    %201 = vector.broadcast %cst_105 : f32 to vector<2x32xf32>
    %202 = arith.cmpf oge, %200, %201 : vector<2x32xf32>
    %cst_106 = arith.constant 2.000000e-01 : f32
    %203 = vector.broadcast %cst_106 : f32 to vector<2x32xf32>
    %204 = arith.mulf %203, %200 : vector<2x32xf32>
    %205 = arith.select %202, %200, %204 : vector<2x32xi1>, vector<2x32xf32>
    %206 = arith.mulf %205, %205 : vector<2x32xf32>
    %cst_107 = arith.constant dense<0.000000e+00> : vector<2xf32>
    %207 = vector.multi_reduction <add>, %206, %cst_107 [1] : vector<2x32xf32> to vector<2xf32>
    %208 = vector.shape_cast %207 : vector<2xf32> to vector<2x1xf32>
    %cst_108 = arith.constant 3.200000e+01 : f32
    %209 = vector.broadcast %cst_108 : f32 to vector<2x1xf32>
    %210 = arith.divf %208, %209 : vector<2x1xf32>
    %cst_109 = arith.constant 9.99999993E-9 : f32
    %211 = vector.broadcast %cst_109 : f32 to vector<2x1xf32>
    %212 = arith.addf %210, %211 : vector<2x1xf32>
    %213 = math.sqrt %212 : vector<2x1xf32>
    %214 = vector.broadcast %213 : vector<2x1xf32> to vector<2x32xf32>
    %215 = arith.divf %205, %214 : vector<2x32xf32>
    %c0_110 = arith.constant 0 : index
    %c0_111 = arith.constant 0 : index
    %216 = vector.load %arg26[%c0_110, %c0_111] : memref<2x32xf32, #tpu.memory_space<vmem>>, vector<2x32xf32>
    tpu.vector_store %arg26[%c0_110, %c0_111], %215 {strides = array<i32>} : memref<2x32xf32, #tpu.memory_space<vmem>>, vector<2x32xf32>,
    %c0_112 = arith.constant 0 : index
    %c0_113 = arith.constant 0 : index
    %217 = vector.load %arg24[%c0_112, %c0_113] : memref<32x1024xf32, #tpu.memory_space<vmem>>, vector<32x1024xf32>
    %cst_114 = arith.constant dense<0.000000e+00> : vector<2x1024xf32>
    %218 = tpu.matmul %215, %217, %cst_114 {dimension_numbers = #tpu.dot_dimension_numbers<[1], [0], [0], [1], [0, 0, 1, 1], [], []>} : vector<2x32xf32>, vector<32x1024xf32>, vector<2x1024xf32> -> vector<2x1024xf32>
    %c0_115 = arith.constant 0 : index
    %c0_116 = arith.constant 0 : index
    %219 = vector.load %arg25[%c0_115, %c0_116] : memref<1x1024xf32, #tpu.memory_space<vmem>>, vector<1x1024xf32>
    %220 = vector.broadcast %219 : vector<1x1024xf32> to vector<2x1024xf32>
    %221 = arith.addf %218, %220 : vector<2x1024xf32>
    %c0_117 = arith.constant 0 : index
    %c0_118 = arith.constant 0 : index
    %222 = vector.load %arg27[%c0_117, %c0_118] : memref<2x1024xf32, #tpu.memory_space<vmem>>, vector<2x1024xf32>
    tpu.vector_store %arg27[%c0_117, %c0_118], %221 {strides = array<i32>} : memref<2x1024xf32, #tpu.memory_space<vmem>>, vector<2x1024xf32>,
    return
  }
}

</mosaic_0001>

<bundles_post_ra>
// kernel: tpu_custom_call.1
= control target key start
LH: loop header
LB: loop body
LE: loop exit
PB: predicated region body
PF: predicated region fallthrough
CT: control target
= control target key end

     0   :  { %s2184_s0 = inlined_call_operand.hbm [shape: f32[2,32], index: 0, kind: input, shape index: {}]   ;;  %s2185_s1 = inlined_call_operand.hbm [shape: f32[2,8], index: 1, kind: input, shape index: {}]   ;;  %s2186_s2 = inlined_call_operand.vmem [shape: f32[32,32], index: 2, kind: input, shape index: {}]   ;;  %s2187_s3 = inlined_call_operand.vmem [shape: f32[1,32], index: 3, kind: input, shape index: {}]   ;;  %s2188_s4 = inlined_call_operand.hbm [shape: f32[8,32], index: 4, kind: input, shape index: {}]   ;;  %s2189_s5 = inlined_call_operand.hbm [shape: f32[1,32], index: 5, kind: input, shape index: {}]   ;;  %s2190_s6 = inlined_call_operand.vmem [shape: f32[64,32], index: 6, kind: input, shape index: {}]   ;;  %s2191_s7 = inlined_call_operand.hbm [shape: f32[1,32], index: 7, kind: input, shape index: {}]   ;;  %s2192_s8 = inlined_call_operand.vmem [shape: f32[32,32], index: 8, kind: input, shape index: {}]   ;;  %s2193_s9 = inlined_call_operand.hbm [shape: f32[1,32], index: 9, kind: input, shape index: {}]   ;;  %s2194_s10 = inlined_call_operand.vmem [shape: f32[32,32], index: 10, kind: input, shape index: {}]   ;;  %s2195_s11 = inlined_call_operand.hbm [shape: f32[1,32], index: 11, kind: input, shape index: {}]   ;;  %s2196_s12 = inlined_call_operand.hbm [shape: f32[32,32], index: 12, kind: input, shape index: {}]   ;;  %s2197_s13 = inlined_call_operand.vmem [shape: f32[1,32], index: 13, kind: input, shape index: {}]   ;;  %s2198_s14 = inlined_call_operand.hbm [shape: f32[32,32], index: 14, kind: input, shape index: {}]   ;;  %s2199_s15 = inlined_call_operand.vmem [shape: f32[1,32], index: 15, kind: input, shape index: {}]   ;;  %s2200_s16 = inlined_call_operand.hbm [shape: f32[32,32], index: 16, kind: input, shape index: {}]   ;;  %s2201_s17 = inlined_call_operand.vmem [shape: f32[1,32], index: 17, kind: input, shape index: {}]   ;;  %s2202_s18 = inlined_call_operand.hbm [shape: f32[32,32], index: 18, kind: input, shape index: {}]   ;;  %s2203_s19 = inlined_call_operand.vmem [shape: f32[1,32], index: 19, kind: input, shape index: {}]   ;;  %s2204_s20 = inlined_call_operand.hbm [shape: f32[32,32], index: 20, kind: input, shape index: {}]   ;;  %s2205_s21 = inlined_call_operand.vmem [shape: f32[1,32], index: 21, kind: input, shape index: {}]   ;;  %s2206_s22 = inlined_call_operand.hbm [shape: f32[32,32], index: 22, kind: input, shape index: {}]   ;;  %s2207_s23 = inlined_call_operand.vmem [shape: f32[1,32], index: 23, kind: input, shape index: {}]   ;;  %s2208_s24 = inlined_call_operand.hbm [shape: f32[32,1024], index: 24, kind: input, shape index: {}]   ;;  %s2209_s25 = inlined_call_operand.vmem [shape: f32[1,1024], index: 25, kind: input, shape index: {}]   ;;  %s2210_s26 = inlined_call_operand.hbm [shape: f32[2,32], index: 26, kind: output, shape index: {0}]   ;;  %s2211_s27 = inlined_call_operand.hbm [shape: f32[2,1024], index: 27, kind: output, shape index: {1}]  }
   0x1   :  { %2216 = sst [smem:[#allocation38_spill]] %s2184_s0 }
   0x2   :  { %2217 = sst [smem:[#allocation39_spill]] %s2185_s1 }
   0x3   :  { %2218 = sst [smem:[#allocation40_spill]] %s2186_s2 }
   0x4   :  { %2219 = sst [smem:[#allocation41_spill]] %s2187_s3 }
   0x5   :  { %2220 = sst [smem:[#allocation42_spill]] %s2188_s4 }
   0x6   :  { %2221 = sst [smem:[#allocation43_spill]] %s2189_s5 }
   0x7   :  { %2222 = sst [smem:[#allocation44_spill]] %s2190_s6 }
   0x8   :  { %2223 = sst [smem:[#allocation45_spill]] %s2191_s7 }
   0x9   :  { %2224 = sst [smem:[#allocation46_spill]] %s2192_s8 }
   0xa   :  { %2225 = sst [smem:[#allocation47_spill]] %s2193_s9 }
   0xb   :  { %2226 = sst [smem:[#allocation48_spill]] %s2194_s10 }
   0xc   :  { %2227 = sst [smem:[#allocation49_spill]] %s2195_s11 }
   0xd   :  { %2228 = sst [smem:[#allocation50_spill]] %s2209_s25 }
   0xe   :  { %2229 = sst [smem:[#allocation51_spill]] %s2211_s27 }
   0xf   :  { %33 = vsyncpa [#allocation3], 0 }
  0x10   :  { %34 = vsyncpa [#allocation6], 0 }
  0x11   :  { %35 = vsyncpa [#allocation9], 0 }
  0x12   :  { %36 = vsyncpa [#allocation12], 0 }
  0x13   :  { %37 = vsyncpa [#allocation15], 0 }
  0x14   :  { %38 = vsyncpa [#allocation18], 0 }
  0x15   :  { %39 = vsyncpa [#allocation21], 0 }
  0x16   :  { %40 = vsyncpa [#allocation24], 0 }
  0x17   :  { %41 = vsyncpa [#allocation4], 0  ;;  %s2230_s8 = sld [smem:[#allocation39_spill]] }
  0x1d   :  { %s59_s30 = sshll.u32 %s2230_s8, 4  ;;  %s60_s30 = int_to_ptr.hbm [resolvable:$true] %s59_s30 }
  0x1e   :  { %42 = vsyncpa [#allocation27], 0  ;;  %s1811_s9 = smov [#allocation5]   ;;  %s2231_s10 = sld [smem:[#allocation43_spill]] }
  0x1f   :  { %s61_s5 = sshll.u32 %s1811_s9, 4  ;;  %s1812_s1 = smov [#allocation8]   ;;  %s62_s5 = int_to_ptr.vmem [resolvable:$true] %s61_s5 }
  0x20   :  { %64 = dma.hbm_to_vmem [thread:$0]  %s60_s30, 32, %s62_s5, [#allocation6]  }
  0x21   :  { %s87_s6 = sshll.u32 %s1812_s1, 4  ;;  %s2232_s3 = sld [smem:[#allocation47_spill]]  ;;  %s88_s6 = int_to_ptr.vmem [resolvable:$true] %s87_s6 }
  0x22   :  { %s134_s8 = sshll.u32 %s2196_s12, 4  ;;  %s1813_s9 = smov [#allocation11]   ;;  %s135_s8 = int_to_ptr.hbm [resolvable:$true] %s134_s8 }
  0x23   :  { %s113_s25 = sshll.u32 %s1813_s9, 4  ;;  %s1814_s30 = smov [#allocation14]   ;;  %s114_s25 = int_to_ptr.vmem [resolvable:$true] %s113_s25 }
  0x24   :  { %s85_s29 = sshll.u32 %s2231_s10, 4  ;;  %s136_s5 = sshll.u32 %s1814_s30, 4  ;;  %s86_s29 = int_to_ptr.hbm [resolvable:$true] %s85_s29  ;;  %s137_s5 = int_to_ptr.vmem [resolvable:$true] %s136_s5 }
  0x25   :  { %90 = dma.hbm_to_vmem [thread:$0]  %s86_s29, 16, %s88_s6, [#allocation9]  }
  0x26   :  { %s1815_s28 = smov 128   ;;  %s1816_s0 = smov 8  }
  0x27   :  { %s111_s27 = sshll.u32 %s2232_s3, 4  ;;  %s164_s1 = sshll.u32 %s2200_s16, 4  ;;  %s112_s27 = int_to_ptr.hbm [resolvable:$true] %s111_s27  ;;  %s165_s1 = int_to_ptr.hbm [resolvable:$true] %s164_s1 }
  0x28   :  { %116 = dma.hbm_to_vmem [thread:$0]  %s112_s27, 16, %s114_s25, [#allocation12]  }
  0x29   :  { %142 = dma.hbm_to_vmem [thread:$0]  %s135_s8, 512, %s137_s5, [#allocation15], %s1815_s28, %s1815_s28, %s1816_s0  }
  0x2a   :  { %s1817_s12 = smov [#allocation17]   ;;  %s194_s25 = sshll.u32 %s2204_s20, 4  ;;  %s195_s25 = int_to_ptr.hbm [resolvable:$true] %s194_s25 }
  0x2b   :  { %s166_s6 = sshll.u32 %s1817_s12, 4  ;;  %s1818_s27 = smov [#allocation20]   ;;  %s167_s6 = int_to_ptr.vmem [resolvable:$true] %s166_s6 }
  0x2c   :  { %172 = dma.hbm_to_vmem [thread:$0]  %s165_s1, 512, %s167_s6, [#allocation18], %s1815_s28, %s1815_s28, %s1816_s0  }
  0x2d   :  { %s196_s3 = sshll.u32 %s1818_s27, 4  ;;  %s2233_s8 = sld [smem:[#allocation38_spill]]  ;;  %s197_s3 = int_to_ptr.vmem [resolvable:$true] %s196_s3 }
  0x2e   :  { %202 = dma.hbm_to_vmem [thread:$0]  %s195_s25, 512, %s197_s3, [#allocation21], %s1815_s28, %s1815_s28, %s1816_s0  }
  0x2f   :  { %s2234_s20 = sld [smem:[#allocation42_spill]]  ;;  %s1819_s10 = smov [#allocation2]  }
  0x30   :  { %s50_s29 = sshll.u32 %s1819_s10, 4  ;;  %s1820_s1 = smov [#allocation7]   ;;  %s51_s29 = int_to_ptr.vmem [resolvable:$true] %s50_s29 }
  0x31   :  { %s76_s12 = sshll.u32 %s1820_s1, 4  ;;  %s2235_s2 = sld [smem:[#allocation45_spill]]  ;;  %s77_s12 = int_to_ptr.vmem [resolvable:$true] %s76_s12 }
  0x32   :  { %s2236_s3 = sld [smem:[#allocation49_spill]]  ;;  %s1822_s30 = smov [#allocation13]  }
  0x33   :  { %s48_s9 = sshll.u32 %s2233_s8, 4  ;;  %s1821_s8 = smov [#allocation10]   ;;  %s49_s9 = int_to_ptr.hbm [resolvable:$true] %s48_s9 }
  0x34   :  { %53 = dma.hbm_to_vmem [thread:$0]  %s49_s9, 32, %s51_s29, [#allocation3]  }
  0x35   :  { %s74_s5 = sshll.u32 %s2234_s20, 4  ;;  %s100_s16 = sshll.u32 %s1821_s8, 4  ;;  %s75_s5 = int_to_ptr.hbm [resolvable:$true] %s74_s5  ;;  %s101_s16 = int_to_ptr.vmem [resolvable:$true] %s100_s16 }
  0x36   :  { %79 = dma.hbm_to_vmem [thread:$0]  %s75_s5, 128, %s77_s12, [#allocation6]  }
  0x37   :  { %s98_s27 = sshll.u32 %s2235_s2, 4  ;;  %s126_s9 = sshll.u32 %s1822_s30, 4  ;;  %s99_s27 = int_to_ptr.hbm [resolvable:$true] %s98_s27  ;;  %s127_s9 = int_to_ptr.vmem [resolvable:$true] %s126_s9 }
  0x38   :  { %s124_s4 = sshll.u32 %s2236_s3, 4  ;;  %s149_s29 = sshll.u32 %s2198_s14, 4  ;;  %s125_s4 = int_to_ptr.hbm [resolvable:$true] %s124_s4  ;;  %s150_s29 = int_to_ptr.hbm [resolvable:$true] %s149_s29 }
  0x39   :  { %103 = dma.hbm_to_vmem [thread:$0]  %s99_s27, 16, %s101_s16, [#allocation9]  }
  0x3a   :  { %129 = dma.hbm_to_vmem [thread:$0]  %s125_s4, 16, %s127_s9, [#allocation12]  }
  0x3b   :  { %s179_s12 = sshll.u32 %s2202_s18, 4  ;;  %s1823_s6 = smov [#allocation16]   ;;  %s180_s12 = int_to_ptr.hbm [resolvable:$true] %s179_s12 }
  0x3c   :  { %s151_s11 = sshll.u32 %s1823_s6, 4  ;;  %s1824_s2 = smov [#allocation19]   ;;  %s152_s11 = int_to_ptr.vmem [resolvable:$true] %s151_s11 }
  0x3d   :  { %157 = dma.hbm_to_vmem [thread:$0]  %s150_s29, 512, %s152_s11, [#allocation15], %s1815_s28, %s1815_s28, %s1816_s0  }
  0x3e   :  { %s181_s27 = sshll.u32 %s1824_s2, 4  ;;  %s209_s14 = sshll.u32 %s2206_s22, 4  ;;  %s182_s27 = int_to_ptr.vmem [resolvable:$true] %s181_s27  ;;  %s210_s14 = int_to_ptr.hbm [resolvable:$true] %s209_s14 }
  0x3f   :  { %187 = dma.hbm_to_vmem [thread:$0]  %s180_s12, 512, %s182_s27, [#allocation18], %s1815_s28, %s1815_s28, %s1816_s0  }
  0x40   :  { %s224_s4 = sshll.u32 %s2208_s24, 4  ;;  %s1825_s8 = smov [#allocation22]   ;;  %s225_s4 = int_to_ptr.hbm [resolvable:$true] %s224_s4 }
  0x41   :  { %s211_s16 = sshll.u32 %s1825_s8, 4  ;;  %s1826_s30 = smov [#allocation23]   ;;  %s212_s16 = int_to_ptr.vmem [resolvable:$true] %s211_s16 }
  0x42   :  { %217 = dma.hbm_to_vmem [thread:$0]  %s210_s14, 512, %s212_s16, [#allocation21], %s1815_s28, %s1815_s28, %s1816_s0  }
  0x43   :  { %s226_s22 = sshll.u32 %s1826_s30, 4  ;;  %s1827_s9 = smov 1024   ;;  %s227_s22 = int_to_ptr.vmem [resolvable:$true] %s226_s22 }
  0x44   :  { %s1828_s20 = smov 64  }
  0x45   :  { %232 = dma.hbm_to_vmem [thread:$0]  %s225_s4, 4096, %s227_s22, [#allocation24], %s1827_s9, %s1827_s9, %s1828_s20  }
  0x46   :  { %1791 = dma.done.wait [#allocation3], 32  }
  0x47   :  { %1792 = vsyncadd [#allocation3], 4294967264 }
  0x48   :  { %1793 = dma.done.wait [#allocation6], 160  }
  0x49   :  { %1794 = vsyncadd [#allocation6], 4294967136 }
  0x4a   :  { %1795 = dma.done.wait [#allocation9], 32  }
  0x4b   :  { %1796 = vsyncadd [#allocation9], 4294967264 }
  0x4c   :  { %1797 = dma.done.wait [#allocation12], 32  }
  0x4d   :  { %1798 = vsyncadd [#allocation12], 4294967264 }
  0x4e   :  { %1799 = dma.done.wait [#allocation15], 1024  }
  0x4f   :  { %1800 = vsyncadd [#allocation15], 4294966272 }
  0x50   :  { %1801 = dma.done.wait [#allocation18], 1024  }
  0x51   :  { %1802 = vsyncadd [#allocation18], 4294966272 }
  0x52   :  { %1803 = dma.done.wait [#allocation21], 1024  }
  0x53   :  { %1804 = vsyncadd [#allocation21], 4294966272 }
  0x54   :  { %1805 = dma.done.wait [#allocation24], 4096  }
  0x55   :  { %1806 = vsyncadd [#allocation24], 4294963200  ;;  %vm293_vm0 = vcmask 254976   ;;  %v291_v0 = vld [vmem:[#allocation2] sm:$0x3]  ;;  %v1829_v3 = vmov 32.0  }
  0x56   :  { %v292_v1 = vmul.f32 %v291_v0, %v291_v0  ;;  %1365 = vrcp.f32 %v1829_v3  ;;  %s2237_s0 = sld [smem:[#allocation40_spill]]  ;;  %vm374_vm1 = vcmask 64512   ;;  %v369_v7 = vld [vmem:[#allocation7] sm:$0xff]  ;;  %v368_v8 = vld [vmem:[#allocation5] sm:$0x3]  ;;  %vm341_vm9 = vcmask 261120  }
  0x57   :  { %393 = vmatpush.msra.mxu1 %v369_v7  ;;  %s2238_s27 = sld [smem:[#allocation44_spill]]  ;;  %v1354_v43 = vld [vmem:[#allocation8] ss:$0 sm:$0xff]  ;;  %v1356_v58 = vld [vmem:[#allocation10] ss:$0 sm:$0xff]  ;;  %s1830_s6 = smov [#allocation25]  }
  0x58   :  { %v294_v2 = vsel %vm293_vm0, %v292_v1, 0.0  ;;  %1314 = vmatmul.msk.f32.vlgmr.msra.gmra.mxu1 %vm374_vm1, %v368_v8  ;;  %s2239_s29 = sld [smem:[#allocation41_spill]]  ;;  %s1278_s11 = sshll.u32 %s1830_s6, 4  ;;  %s1279_s11 = int_to_ptr.vmem [resolvable:$true] %s1278_s11 }
  0x59   :  { %295 = vadd.xlane.f32.xlu0 %v294_v2  ;;  %s2240_s12 = sld [smem:[#allocation46_spill]] }
  0x5a   :  { %s2241_s3 = sld [smem:[#allocation48_spill]] }
  0x5b   :  { %s2242_s7 = sld [smem:[#allocation50_spill]] }
  0x5c   :  { %v1366_v4 = vpop.eup %1365  ;;  %v336_v5 = vld [vmem:[%s2237_s0 + $0x18] sm:$0xff]  ;;  %v335_v6 = vld [vmem:[%s2237_s0 + $0x10] sm:$0xff]  ;;  %v334_v10 = vld [vmem:[%s2237_s0 + $0x8] sm:$0xff] }
  0x5d   :  { %357 = vmatpush.msra.mxu0 %v336_v5  ;;  %v298_v9 = vmul.f32 32.0, %v1366_v4  ;;  %v333_v11 = vld [vmem:[%s2237_s0] sm:$0xff]  ;;  %vm302_vm2 = vweird.f32 %v1366_v4  ;;  %v408_v21 = vld [vmem:[%s2238_s27 + $0x38] sm:$0xff]  ;;  %v407_v41 = vld [vmem:[%s2238_s27 + $0x30] sm:$0xff] }
  0x5e   :  { %425 = vmatpush.msra.mxu2 %v408_v21  ;;  %v404_v42 = vld [vmem:[%s2238_s27 + $0x18] sm:$0xff]  ;;  %v406_v47 = vld [vmem:[%s2238_s27 + $0x28] sm:$0xff]  ;;  %v403_v48 = vld [vmem:[%s2238_s27 + $0x10] sm:$0xff] }
  0x5f   :  { %358 = vmatpush.msra.mxu0 %v335_v6  ;;  %v299_v12 = vsub.f32 1.0, %v298_v9  ;;  %448 = vmatpush.msra.mxu3 %v404_v42  ;;  %v405_v49 = vld [vmem:[%s2238_s27 + $0x20] sm:$0xff]  ;;  %v402_v50 = vld [vmem:[%s2238_s27 + $0x8] sm:$0xff]  ;;  %v499_v3 = vld [vmem:[%s2240_s12 + $0x18] sm:$0xff] }
  0x60   :  { %426 = vmatpush.msra.mxu2 %v407_v41  ;;  %v401_v52 = vld [vmem:[%s2238_s27] sm:$0xff]  ;;  %519 = vmatpush.msrb.mxu1 %v499_v3  ;;  %v497_v5 = vld [vmem:[%s2240_s12 + $0x8] sm:$0xff]  ;;  %v1358_v3 = vld [vmem:[#allocation13] ss:$0 sm:$0xff] }
  0x61   :  { %359 = vmatpush.msra.mxu0 %v334_v10  ;;  %v300_v13 = vmul.f32 %v1366_v4, %v299_v12  ;;  %449 = vmatpush.msra.mxu3 %v403_v48  ;;  %v1355_v53 = vld [vmem:[%s2239_s29] ss:$0 sm:$0xff]  ;;  %v564_v41 = vld [vmem:[%s2241_s3 + $0x8] sm:$0xff] }
  0x62   :  { %427 = vmatpush.msra.mxu2 %v406_v47  ;;  %v496_v6 = vld [vmem:[%s2240_s12] sm:$0xff] }
  0x63   :  { %360 = vmatpush.msra.mxu0 %v333_v11  ;;  %v301_v14 = vadd.f32 %v1366_v4, %v300_v13  ;;  %450 = vmatpush.msra.mxu3 %v402_v50  ;;  %v563_v42 = vld [vmem:[%s2241_s3] sm:$0xff] }
  0x64   :  { %428 = vmatpush.msra.mxu2 %v405_v49 }
  0x65   :  { %v2045_v15 = vsel %vm302_vm2, %v1366_v4, %v301_v14  ;;  %451 = vmatpush.msra.mxu3 %v401_v52  ;;  %v498_v4 = vld [vmem:[%s2240_s12 + $0x10] sm:$0xff]  ;;  %s1280_s12 = sshll.u32 %s2210_s26, 4  ;;  %s1831_s26 = smov [#allocation26]   ;;  %s1281_s12 = int_to_ptr.hbm [resolvable:$true] %s1280_s12 }
  0x66   :  { %520 = vmatpush.msrb.mxu1 %v498_v4  ;;  %s1289_s25 = sshll.u32 %s1831_s26, 4  ;;  %s1290_s25 = int_to_ptr.vmem [resolvable:$true] %s1289_s25 }
  0x68   :  { %521 = vmatpush.msrb.mxu1 %v497_v5 }
  0x6a   :  { %522 = vmatpush.msrb.mxu1 %v496_v6 }
  0xcc   :  { %v296_v16 = vpop.xlane.xlu0 %295 }
  0xcd   :  { %v304_v17 = vmul.f32 %v2045_v15, %v296_v16 }
  0xcf   :  { %v305_v18 = vadd.f32 1e-08, %v304_v17 }
  0xd1   :  { %1367 = vrsqrt.f32 %v305_v18  ;;  %vm313_vm3 = vcmp.eq.f32.partialorder %v305_v18, inf  ;;  %v316_v27 = vand.u32 2147483648, %v305_v18  ;;  %vm315_vm4 = vcmp.eq.f32.partialorder %v305_v18, 0.0 }
  0xd5   :  { %v395_v44 = vpop.f32.mrf.mxu1 }
  0xd6   :  { %v396_v45 = vadd.f32 %v1354_v43, %v395_v44 }
  0xd7   :  { %v1368_v19 = vpop.eup %1367 }
  0xd8   :  { %v307_v20 = vmul.f32 %v1368_v19, %v305_v18  ;;  %v399_v46 = vmul.f32 0.01, %v396_v45  ;;  %vm398_vm10 = vcmp.ge.f32.partialorder %v396_v45, 0.0 }
  0xda   :  { %v308_v22 = vmul.f32 %v1368_v19, %v307_v20  ;;  %v400_v51 = vsel %vm398_vm10, %v396_v45, %v399_v46 }
  0xdb   :  { %1315 = vmatmul.msk.f32.vlgmr.msra.gmra.mxu2 %vm341_vm9, %v400_v51 }
  0xdc   :  { %v309_v23 = vmul.f32 0.5, %v308_v22 }
  0xde   :  { %v310_v24 = vsub.f32 1.5, %v309_v23 }
  0xe0   :  { %v311_v25 = vmul.f32 %v1368_v19, %v310_v24 }
  0xe2   :  { %v312_v26 = vmul.f32 %v311_v25, %v305_v18 }
  0xe4   :  { %v314_v28 = vsel %vm313_vm3, %v305_v18, %v312_v26 }
  0xe5   :  { %v317_v29 = vsel %vm315_vm4, %v316_v27, %v314_v28 }
  0xe6   :  { %1369 = vrcp.f32 %v317_v29  ;;  %v329_v33 = vand.u32 2147483648, %v317_v29  ;;  %v327_v35 = vand.u32 2147483647, %v317_v29  ;;  %vm323_vm6 = vweird.f32 %v317_v29 }
  0xe8   :  { %v330_v37 = vor.u32 1.1754944e-38, %v329_v33  ;;  %vm328_vm8 = vcmp.eq.f32.partialorder %v327_v35, 8.507059e+37 }
  0xec   :  { %v1370_v30 = vpop.eup %1369 }
  0xed   :  { %v319_v31 = vmul.f32 %v1370_v30, %v317_v29  ;;  %vm324_vm5 = vweird.f32 %v1370_v30 }
  0xee   :  { %vm325_vm7 = vmor %vm323_vm6, %vm324_vm5 }
  0xef   :  { %v320_v32 = vsub.f32 1.0, %v319_v31 }
  0xf1   :  { %v321_v34 = vmul.f32 %v1370_v30, %v320_v32  ;;  %v1357_v32 = vld [vmem:[#allocation11] ss:$0 sm:$0xff] }
  0xf3   :  { %v322_v36 = vadd.f32 %v1370_v30, %v321_v34 }
  0xf5   :  { %v326_v38 = vsel %vm325_vm7, %v1370_v30, %v322_v36 }
  0xf6   :  { %v331_v39 = vsel %vm328_vm8, %v330_v37, %v326_v38 }
  0xf7   :  { %v332_v40 = vmul.f32 %v331_v39, %v291_v0  ;;  %v566_v39 = vld [vmem:[%s2241_s3 + $0x18] sm:$0xff] }
  0xf8   :  { %586 = vmatpush.msrb.mxu0 %v566_v39  ;;  %v1359_v39 = vld [vmem:[%s2197_s13] ss:$0 sm:$0xff] }
  0xf9   :  { %1313 = vmatmul.msk.f32.vlgmr.msra.gmra.mxu0 %vm341_vm9, %v332_v40  ;;  %v565_v40 = vld [vmem:[%s2241_s3 + $0x10] sm:$0xff]  ;;  %s2243_s3 = sld [smem:[#allocation51_spill]] }
  0xfa   :  { %587 = vmatpush.msrb.mxu0 %v565_v40 }
  0xfc   :  { %588 = vmatpush.msrb.mxu0 %v564_v41 }
  0xfe   :  { %589 = vmatpush.msrb.mxu0 %v563_v42 }
  0xff   :  { %s1291_s4 = sshll.u32 %s2243_s3, 4  ;;  %s1292_s4 = int_to_ptr.hbm [resolvable:$true] %s1291_s4 }
 0x15e   :  { %v430_v59 = vpop.f32.mrf.mxu2 }
 0x176   :  { %v362_v54 = vpop.f32.mrf.mxu0 }
 0x177   :  { %v363_v55 = vadd.f32 %v1355_v53, %v362_v54 }
 0x179   :  { %v366_v56 = vmul.f32 0.01, %v363_v55  ;;  %vm365_vm11 = vcmp.ge.f32.partialorder %v363_v55, 0.0 }
 0x17b   :  { %v367_v57 = vsel %vm365_vm11, %v363_v55, %v366_v56 }
 0x17c   :  { %1316 = vmatmul.msk.f32.vlgmr.msra.gmra.mxu3 %vm341_vm9, %v367_v57 }
 0x1ff   :  { %v453_v60 = vpop.f32.mrf.mxu3 }
 0x200   :  { %v454_v61 = vadd.f32 %v453_v60, %v430_v59 }
 0x202   :  { %v459_v62 = vadd.f32 %v1356_v58, %v454_v61 }
 0x204   :  { %v461_v63 = vmul.f32 0.2, %v459_v62  ;;  %vm460_vm12 = vcmp.ge.f32.partialorder %v459_v62, 0.0 }
 0x206   :  { %v462_v0 = vsel %vm460_vm12, %v459_v62, %v461_v63 }
 0x207   :  { %v463_v1 = vmul.f32 %v462_v0, %v462_v0 }
 0x209   :  { %v464_v2 = vsel %vm293_vm0, %v463_v1, 0.0 }
 0x20a   :  { %465 = vadd.xlane.f32.xlu0 %v464_v2 }
 0x27d   :  { %v466_v7 = vpop.xlane.xlu0 %465 }
 0x27e   :  { %v467_v8 = vmul.f32 %v466_v7, %v2045_v15 }
 0x280   :  { %v468_v9 = vadd.f32 1e-08, %v467_v8 }
 0x282   :  { %1371 = vrsqrt.f32 %v468_v9  ;;  %vm476_vm13 = vcmp.eq.f32.partialorder %v468_v9, inf  ;;  %v479_v18 = vand.u32 2147483648, %v468_v9  ;;  %vm478_vm14 = vcmp.eq.f32.partialorder %v468_v9, 0.0 }
 0x288   :  { %v1372_v10 = vpop.eup %1371 }
 0x289   :  { %v470_v11 = vmul.f32 %v1372_v10, %v468_v9 }
 0x28b   :  { %v471_v12 = vmul.f32 %v1372_v10, %v470_v11  ;;  %v632_v11 = vld [vmem:[#allocation14 + $0x10] sm:$0xff] }
 0x28d   :  { %v472_v13 = vmul.f32 0.5, %v471_v12  ;;  %v631_v12 = vld [vmem:[#allocation14 + $0x8] sm:$0xff] }
 0x28f   :  { %v473_v14 = vsub.f32 1.5, %v472_v13  ;;  %v630_v13 = vld [vmem:[#allocation14] sm:$0xff] }
 0x291   :  { %v474_v16 = vmul.f32 %v1372_v10, %v473_v14  ;;  %v633_v10 = vld [vmem:[#allocation14 + $0x18] sm:$0xff] }
 0x292   :  { %653 = vmatpush.msrb.mxu2 %v633_v10  ;;  %v1360_v10 = vld [vmem:[%s2199_s15] ss:$0 sm:$0xff] }
 0x293   :  { %v475_v17 = vmul.f32 %v474_v16, %v468_v9 }
 0x294   :  { %654 = vmatpush.msrb.mxu2 %v632_v11 }
 0x295   :  { %v477_v19 = vsel %vm476_vm13, %v468_v9, %v475_v17 }
 0x296   :  { %v480_v20 = vsel %vm478_vm14, %v479_v18, %v477_v19  ;;  %655 = vmatpush.msrb.mxu2 %v631_v12 }
 0x297   :  { %1373 = vrcp.f32 %v480_v20  ;;  %v492_v24 = vand.u32 2147483648, %v480_v20  ;;  %v490_v26 = vand.u32 2147483647, %v480_v20  ;;  %vm486_vm1 = vweird.f32 %v480_v20 }
 0x298   :  { %656 = vmatpush.msrb.mxu2 %v630_v13 }
 0x299   :  { %v493_v28 = vor.u32 1.1754944e-38, %v492_v24  ;;  %vm491_vm3 = vcmp.eq.f32.partialorder %v490_v26, 8.507059e+37 }
 0x29d   :  { %v1374_v21 = vpop.eup %1373 }
 0x29e   :  { %v482_v22 = vmul.f32 %v1374_v21, %v480_v20  ;;  %vm487_vm15 = vweird.f32 %v1374_v21 }
 0x29f   :  { %vm488_vm2 = vmor %vm486_vm1, %vm487_vm15 }
 0x2a0   :  { %v483_v23 = vsub.f32 1.0, %v482_v22 }
 0x2a2   :  { %v484_v25 = vmul.f32 %v1374_v21, %v483_v23 }
 0x2a4   :  { %v485_v27 = vadd.f32 %v1374_v21, %v484_v25 }
 0x2a6   :  { %v489_v29 = vsel %vm488_vm2, %v1374_v21, %v485_v27 }
 0x2a7   :  { %v494_v30 = vsel %vm491_vm3, %v493_v28, %v489_v29 }
 0x2a8   :  { %v495_v31 = vmul.f32 %v494_v30, %v462_v0 }
 0x2aa   :  { %1317 = vmatmul.msk.f32.vlgmr.msrb.gmra.mxu1 %vm341_vm9, %v495_v31 }
 0x327   :  { %v524_v33 = vpop.f32.mrf.mxu1 }
 0x328   :  { %v525_v34 = vadd.f32 %v1357_v32, %v524_v33 }
 0x32a   :  { %v528_v35 = vmul.f32 0.2, %v525_v34  ;;  %vm527_vm4 = vcmp.ge.f32.partialorder %v525_v34, 0.0 }
 0x32c   :  { %v529_v36 = vsel %vm527_vm4, %v525_v34, %v528_v35 }
 0x32d   :  { %v530_v37 = vmul.f32 %v529_v36, %v529_v36 }
 0x32f   :  { %v531_v38 = vsel %vm293_vm0, %v530_v37, 0.0 }
 0x330   :  { %532 = vadd.xlane.f32.xlu1 %v531_v38 }
 0x3a3   :  { %v533_v43 = vpop.xlane.xlu1 %532 }
 0x3a4   :  { %v534_v44 = vmul.f32 %v533_v43, %v2045_v15 }
 0x3a6   :  { %v535_v45 = vadd.f32 1e-08, %v534_v44 }
 0x3a8   :  { %1375 = vrsqrt.f32 %v535_v45  ;;  %vm543_vm5 = vcmp.eq.f32.partialorder %v535_v45, inf  ;;  %v546_v53 = vand.u32 2147483648, %v535_v45  ;;  %vm545_vm6 = vcmp.eq.f32.partialorder %v535_v45, 0.0 }
 0x3ae   :  { %v1376_v46 = vpop.eup %1375 }
 0x3af   :  { %v537_v47 = vmul.f32 %v1376_v46, %v535_v45 }
 0x3b1   :  { %v538_v48 = vmul.f32 %v1376_v46, %v537_v47  ;;  %v699_v47 = vld [vmem:[#allocation16 + $0x10] sm:$0xff] }
 0x3b3   :  { %v539_v49 = vmul.f32 0.5, %v538_v48  ;;  %v698_v48 = vld [vmem:[#allocation16 + $0x8] sm:$0xff] }
 0x3b5   :  { %v540_v50 = vsub.f32 1.5, %v539_v49  ;;  %v697_v49 = vld [vmem:[#allocation16] sm:$0xff] }
 0x3b7   :  { %v541_v51 = vmul.f32 %v1376_v46, %v540_v50  ;;  %v700_v46 = vld [vmem:[#allocation16 + $0x18] sm:$0xff] }
 0x3b8   :  { %720 = vmatpush.msrb.mxu3 %v700_v46  ;;  %v1361_v46 = vld [vmem:[%s2201_s17] ss:$0 sm:$0xff] }
 0x3b9   :  { %v542_v52 = vmul.f32 %v541_v51, %v535_v45 }
 0x3ba   :  { %721 = vmatpush.msrb.mxu3 %v699_v47 }
 0x3bb   :  { %v544_v54 = vsel %vm543_vm5, %v535_v45, %v542_v52 }
 0x3bc   :  { %v547_v55 = vsel %vm545_vm6, %v546_v53, %v544_v54  ;;  %722 = vmatpush.msrb.mxu3 %v698_v48 }
 0x3bd   :  { %1377 = vrcp.f32 %v547_v55  ;;  %v559_v59 = vand.u32 2147483648, %v547_v55  ;;  %v557_v61 = vand.u32 2147483647, %v547_v55  ;;  %vm553_vm8 = vweird.f32 %v547_v55 }
 0x3be   :  { %723 = vmatpush.msrb.mxu3 %v697_v49 }
 0x3bf   :  { %v560_v63 = vor.u32 1.1754944e-38, %v559_v59  ;;  %vm558_vm11 = vcmp.eq.f32.partialorder %v557_v61, 8.507059e+37 }
 0x3c3   :  { %v1378_v56 = vpop.eup %1377 }
 0x3c4   :  { %v549_v57 = vmul.f32 %v1378_v56, %v547_v55  ;;  %vm554_vm7 = vweird.f32 %v1378_v56 }
 0x3c5   :  { %vm555_vm10 = vmor %vm553_vm8, %vm554_vm7 }
 0x3c6   :  { %v550_v58 = vsub.f32 1.0, %v549_v57 }
 0x3c8   :  { %v551_v60 = vmul.f32 %v1378_v56, %v550_v58 }
 0x3ca   :  { %v552_v62 = vadd.f32 %v1378_v56, %v551_v60 }
 0x3cc   :  { %v556_v0 = vsel %vm555_vm10, %v1378_v56, %v552_v62 }
 0x3cd   :  { %v561_v1 = vsel %vm558_vm11, %v560_v63, %v556_v0 }
 0x3ce   :  { %v562_v2 = vmul.f32 %v561_v1, %v529_v36 }
 0x3d0   :  { %1318 = vmatmul.msk.f32.vlgmr.msrb.gmra.mxu0 %vm341_vm9, %v562_v2 }
 0x44d   :  { %v591_v4 = vpop.f32.mrf.mxu0 }
 0x44e   :  { %v592_v5 = vadd.f32 %v1358_v3, %v591_v4 }
 0x450   :  { %vm594_vm12 = vcmp.ge.f32.partialorder %v592_v5, 0.0  ;;  %v595_v6 = vmul.f32 0.2, %v592_v5 }
 0x452   :  { %v596_v7 = vsel %vm594_vm12, %v592_v5, %v595_v6 }
 0x453   :  { %v597_v8 = vmul.f32 %v596_v7, %v596_v7 }
 0x455   :  { %v598_v9 = vsel %vm293_vm0, %v597_v8, 0.0 }
 0x456   :  { %599 = vadd.xlane.f32.xlu1 %v598_v9 }
 0x4c9   :  { %v600_v14 = vpop.xlane.xlu1 %599 }
 0x4ca   :  { %v601_v16 = vmul.f32 %v600_v14, %v2045_v15 }
 0x4cc   :  { %v602_v17 = vadd.f32 1e-08, %v601_v16 }
 0x4ce   :  { %1379 = vrsqrt.f32 %v602_v17  ;;  %vm610_vm13 = vcmp.eq.f32.partialorder %v602_v17, inf  ;;  %v613_v25 = vand.u32 2147483648, %v602_v17  ;;  %vm612_vm14 = vcmp.eq.f32.partialorder %v602_v17, 0.0 }
 0x4d4   :  { %v1380_v18 = vpop.eup %1379 }
 0x4d5   :  { %v604_v19 = vmul.f32 %v1380_v18, %v602_v17 }
 0x4d7   :  { %v605_v20 = vmul.f32 %v1380_v18, %v604_v19  ;;  %v766_v19 = vld [vmem:[#allocation17 + $0x10] sm:$0xff] }
 0x4d9   :  { %v606_v21 = vmul.f32 0.5, %v605_v20  ;;  %v765_v20 = vld [vmem:[#allocation17 + $0x8] sm:$0xff] }
 0x4db   :  { %v607_v22 = vsub.f32 1.5, %v606_v21  ;;  %v764_v21 = vld [vmem:[#allocation17] sm:$0xff] }
 0x4dd   :  { %v608_v23 = vmul.f32 %v1380_v18, %v607_v22  ;;  %v767_v18 = vld [vmem:[#allocation17 + $0x18] sm:$0xff] }
 0x4de   :  { %787 = vmatpush.msra.mxu1 %v767_v18  ;;  %v1362_v18 = vld [vmem:[%s2203_s19] ss:$0 sm:$0xff] }
 0x4df   :  { %v609_v24 = vmul.f32 %v608_v23, %v602_v17 }
 0x4e0   :  { %788 = vmatpush.msra.mxu1 %v766_v19 }
 0x4e1   :  { %v611_v26 = vsel %vm610_vm13, %v602_v17, %v609_v24 }
 0x4e2   :  { %v614_v27 = vsel %vm612_vm14, %v613_v25, %v611_v26  ;;  %789 = vmatpush.msra.mxu1 %v765_v20 }
 0x4e3   :  { %1381 = vrcp.f32 %v614_v27  ;;  %v626_v31 = vand.u32 2147483648, %v614_v27  ;;  %v624_v33 = vand.u32 2147483647, %v614_v27  ;;  %vm620_vm1 = vweird.f32 %v614_v27 }
 0x4e4   :  { %790 = vmatpush.msra.mxu1 %v764_v21 }
 0x4e5   :  { %v627_v35 = vor.u32 1.1754944e-38, %v626_v31  ;;  %vm625_vm3 = vcmp.eq.f32.partialorder %v624_v33, 8.507059e+37 }
 0x4e9   :  { %v1382_v28 = vpop.eup %1381 }
 0x4ea   :  { %v616_v29 = vmul.f32 %v1382_v28, %v614_v27  ;;  %vm621_vm15 = vweird.f32 %v1382_v28 }
 0x4eb   :  { %vm622_vm2 = vmor %vm620_vm1, %vm621_vm15 }
 0x4ec   :  { %v617_v30 = vsub.f32 1.0, %v616_v29 }
 0x4ee   :  { %v618_v32 = vmul.f32 %v1382_v28, %v617_v30 }
 0x4f0   :  { %v619_v34 = vadd.f32 %v1382_v28, %v618_v32 }
 0x4f2   :  { %v623_v36 = vsel %vm622_vm2, %v1382_v28, %v619_v34 }
 0x4f3   :  { %v628_v37 = vsel %vm625_vm3, %v627_v35, %v623_v36 }
 0x4f4   :  { %v629_v38 = vmul.f32 %v628_v37, %v596_v7 }
 0x4f6   :  { %1319 = vmatmul.msk.f32.vlgmr.msrb.gmra.mxu2 %vm341_vm9, %v629_v38 }
 0x579   :  { %v658_v40 = vpop.f32.mrf.mxu2 }
 0x57a   :  { %v659_v41 = vadd.f32 %v1359_v39, %v658_v40 }
 0x57c   :  { %v662_v42 = vmul.f32 0.2, %v659_v41  ;;  %vm661_vm4 = vcmp.ge.f32.partialorder %v659_v41, 0.0 }
 0x57e   :  { %v663_v43 = vsel %vm661_vm4, %v659_v41, %v662_v42 }
 0x57f   :  { %v664_v44 = vmul.f32 %v663_v43, %v663_v43 }
 0x581   :  { %v665_v45 = vsel %vm293_vm0, %v664_v44, 0.0 }
 0x582   :  { %666 = vadd.xlane.f32.xlu2 %v665_v45 }
 0x5f5   :  { %v667_v50 = vpop.xlane.xlu2 %666 }
 0x5f6   :  { %v668_v51 = vmul.f32 %v667_v50, %v2045_v15 }
 0x5f8   :  { %v669_v52 = vadd.f32 1e-08, %v668_v51 }
 0x5fa   :  { %1383 = vrsqrt.f32 %v669_v52  ;;  %vm677_vm5 = vcmp.eq.f32.partialorder %v669_v52, inf  ;;  %v680_v60 = vand.u32 2147483648, %v669_v52  ;;  %vm679_vm6 = vcmp.eq.f32.partialorder %v669_v52, 0.0 }
 0x600   :  { %v1384_v53 = vpop.eup %1383 }
 0x601   :  { %v671_v54 = vmul.f32 %v1384_v53, %v669_v52 }
 0x603   :  { %v672_v55 = vmul.f32 %v1384_v53, %v671_v54  ;;  %v833_v54 = vld [vmem:[#allocation19 + $0x10] sm:$0xff] }
 0x605   :  { %v673_v56 = vmul.f32 0.5, %v672_v55  ;;  %v832_v55 = vld [vmem:[#allocation19 + $0x8] sm:$0xff] }
 0x607   :  { %v674_v57 = vsub.f32 1.5, %v673_v56  ;;  %v831_v56 = vld [vmem:[#allocation19] sm:$0xff] }
 0x609   :  { %v675_v58 = vmul.f32 %v1384_v53, %v674_v57  ;;  %v834_v53 = vld [vmem:[#allocation19 + $0x18] sm:$0xff] }
 0x60a   :  { %854 = vmatpush.msra.mxu0 %v834_v53  ;;  %v1363_v53 = vld [vmem:[%s2205_s21] ss:$0 sm:$0xff] }
 0x60b   :  { %v676_v59 = vmul.f32 %v675_v58, %v669_v52 }
 0x60c   :  { %855 = vmatpush.msra.mxu0 %v833_v54 }
 0x60d   :  { %v678_v61 = vsel %vm677_vm5, %v669_v52, %v676_v59 }
 0x60e   :  { %v681_v62 = vsel %vm679_vm6, %v680_v60, %v678_v61  ;;  %856 = vmatpush.msra.mxu0 %v832_v55 }
 0x60f   :  { %1385 = vrcp.f32 %v681_v62  ;;  %v693_v2 = vand.u32 2147483648, %v681_v62  ;;  %v691_v4 = vand.u32 2147483647, %v681_v62  ;;  %vm687_vm8 = vweird.f32 %v681_v62 }
 0x610   :  { %857 = vmatpush.msra.mxu0 %v831_v56 }
 0x611   :  { %v694_v6 = vor.u32 1.1754944e-38, %v693_v2  ;;  %vm692_vm11 = vcmp.eq.f32.partialorder %v691_v4, 8.507059e+37 }
 0x615   :  { %v1386_v63 = vpop.eup %1385 }
 0x616   :  { %v683_v0 = vmul.f32 %v1386_v63, %v681_v62  ;;  %vm688_vm7 = vweird.f32 %v1386_v63 }
 0x617   :  { %vm689_vm10 = vmor %vm687_vm8, %vm688_vm7 }
 0x618   :  { %v684_v1 = vsub.f32 1.0, %v683_v0 }
 0x61a   :  { %v685_v3 = vmul.f32 %v1386_v63, %v684_v1 }
 0x61c   :  { %v686_v5 = vadd.f32 %v1386_v63, %v685_v3 }
 0x61e   :  { %v690_v7 = vsel %vm689_vm10, %v1386_v63, %v686_v5 }
 0x61f   :  { %v695_v8 = vsel %vm692_vm11, %v694_v6, %v690_v7 }
 0x620   :  { %v696_v9 = vmul.f32 %v695_v8, %v663_v43 }
 0x622   :  { %1320 = vmatmul.msk.f32.vlgmr.msrb.gmra.mxu3 %vm341_vm9, %v696_v9 }
 0x6a5   :  { %v725_v11 = vpop.f32.mrf.mxu3 }
 0x6a6   :  { %v726_v12 = vadd.f32 %v1360_v10, %v725_v11 }
 0x6a8   :  { %vm728_vm12 = vcmp.ge.f32.partialorder %v726_v12, 0.0  ;;  %v729_v13 = vmul.f32 0.2, %v726_v12 }
 0x6aa   :  { %v730_v14 = vsel %vm728_vm12, %v726_v12, %v729_v13 }
 0x6ab   :  { %v731_v16 = vmul.f32 %v730_v14, %v730_v14 }
 0x6ad   :  { %v732_v17 = vsel %vm293_vm0, %v731_v16, 0.0 }
 0x6ae   :  { %733 = vadd.xlane.f32.xlu2 %v732_v17 }
 0x721   :  { %v734_v22 = vpop.xlane.xlu2 %733 }
 0x722   :  { %v735_v23 = vmul.f32 %v734_v22, %v2045_v15 }
 0x724   :  { %v736_v24 = vadd.f32 1e-08, %v735_v23 }
 0x726   :  { %1387 = vrsqrt.f32 %v736_v24  ;;  %vm744_vm13 = vcmp.eq.f32.partialorder %v736_v24, inf  ;;  %v747_v32 = vand.u32 2147483648, %v736_v24  ;;  %vm746_vm14 = vcmp.eq.f32.partialorder %v736_v24, 0.0 }
 0x72c   :  { %v1388_v25 = vpop.eup %1387 }
 0x72d   :  { %v738_v26 = vmul.f32 %v1388_v25, %v736_v24 }
 0x72f   :  { %v739_v27 = vmul.f32 %v1388_v25, %v738_v26  ;;  %v900_v26 = vld [vmem:[#allocation20 + $0x10] sm:$0xff] }
 0x731   :  { %v740_v28 = vmul.f32 0.5, %v739_v27  ;;  %v899_v27 = vld [vmem:[#allocation20 + $0x8] sm:$0xff] }
 0x733   :  { %v741_v29 = vsub.f32 1.5, %v740_v28  ;;  %v898_v28 = vld [vmem:[#allocation20] sm:$0xff] }
 0x735   :  { %v742_v30 = vmul.f32 %v1388_v25, %v741_v29  ;;  %v901_v25 = vld [vmem:[#allocation20 + $0x18] sm:$0xff] }
 0x736   :  { %921 = vmatpush.msra.mxu2 %v901_v25  ;;  %v1364_v25 = vld [vmem:[%s2207_s23] ss:$0 sm:$0xff] }
 0x737   :  { %v743_v31 = vmul.f32 %v742_v30, %v736_v24 }
 0x738   :  { %922 = vmatpush.msra.mxu2 %v900_v26 }
 0x739   :  { %v745_v33 = vsel %vm744_vm13, %v736_v24, %v743_v31 }
 0x73a   :  { %v748_v34 = vsel %vm746_vm14, %v747_v32, %v745_v33  ;;  %923 = vmatpush.msra.mxu2 %v899_v27 }
 0x73b   :  { %1389 = vrcp.f32 %v748_v34  ;;  %v760_v38 = vand.u32 2147483648, %v748_v34  ;;  %v758_v40 = vand.u32 2147483647, %v748_v34  ;;  %vm754_vm1 = vweird.f32 %v748_v34 }
 0x73c   :  { %924 = vmatpush.msra.mxu2 %v898_v28 }
 0x73d   :  { %v761_v42 = vor.u32 1.1754944e-38, %v760_v38  ;;  %vm759_vm3 = vcmp.eq.f32.partialorder %v758_v40, 8.507059e+37 }
 0x741   :  { %v1390_v35 = vpop.eup %1389 }
 0x742   :  { %v750_v36 = vmul.f32 %v1390_v35, %v748_v34  ;;  %vm755_vm15 = vweird.f32 %v1390_v35 }
 0x743   :  { %vm756_vm2 = vmor %vm754_vm1, %vm755_vm15 }
 0x744   :  { %v751_v37 = vsub.f32 1.0, %v750_v36 }
 0x746   :  { %v752_v39 = vmul.f32 %v1390_v35, %v751_v37 }
 0x748   :  { %v753_v41 = vadd.f32 %v1390_v35, %v752_v39 }
 0x74a   :  { %v757_v43 = vsel %vm756_vm2, %v1390_v35, %v753_v41 }
 0x74b   :  { %v762_v44 = vsel %vm759_vm3, %v761_v42, %v757_v43 }
 0x74c   :  { %v763_v45 = vmul.f32 %v762_v44, %v730_v14 }
 0x74e   :  { %1321 = vmatmul.msk.f32.vlgmr.msra.gmra.mxu1 %vm341_vm9, %v763_v45 }
 0x7cb   :  { %v792_v47 = vpop.f32.mrf.mxu1 }
 0x7cc   :  { %v793_v48 = vadd.f32 %v1361_v46, %v792_v47 }
 0x7ce   :  { %vm795_vm4 = vcmp.ge.f32.partialorder %v793_v48, 0.0  ;;  %v796_v49 = vmul.f32 0.2, %v793_v48 }
 0x7d0   :  { %v797_v50 = vsel %vm795_vm4, %v793_v48, %v796_v49 }
 0x7d1   :  { %v798_v51 = vmul.f32 %v797_v50, %v797_v50 }
 0x7d3   :  { %v799_v52 = vsel %vm293_vm0, %v798_v51, 0.0 }
 0x7d4   :  { %800 = vadd.xlane.f32.xlu0 %v799_v52 }
 0x847   :  { %v801_v57 = vpop.xlane.xlu0 %800 }
 0x848   :  { %v802_v58 = vmul.f32 %v801_v57, %v2045_v15 }
 0x84a   :  { %v803_v59 = vadd.f32 1e-08, %v802_v58 }
 0x84c   :  { %1391 = vrsqrt.f32 %v803_v59  ;;  %vm811_vm5 = vcmp.eq.f32.partialorder %v803_v59, inf  ;;  %v814_v3 = vand.u32 2147483648, %v803_v59  ;;  %vm813_vm6 = vcmp.eq.f32.partialorder %v803_v59, 0.0 }
 0x852   :  { %v1392_v60 = vpop.eup %1391 }
 0x853   :  { %v805_v61 = vmul.f32 %v1392_v60, %v803_v59 }
 0x855   :  { %v806_v62 = vmul.f32 %v1392_v60, %v805_v61  ;;  %v967_v61 = vld [vmem:[#allocation22 + $0x10] sm:$0xff] }
 0x857   :  { %v807_v63 = vmul.f32 0.5, %v806_v62  ;;  %v966_v62 = vld [vmem:[#allocation22 + $0x8] sm:$0xff] }
 0x859   :  { %v808_v0 = vsub.f32 1.5, %v807_v63  ;;  %v965_v63 = vld [vmem:[#allocation22] sm:$0xff] }
 0x85b   :  { %v809_v1 = vmul.f32 %v1392_v60, %v808_v0  ;;  %v968_v60 = vld [vmem:[#allocation22 + $0x18] sm:$0xff] }
 0x85c   :  { %988 = vmatpush.msra.mxu3 %v968_v60  ;;  %v1053_v60 = vld [vmem:[#allocation23 + $0xa0] sm:$0xff] }
 0x85d   :  { %v810_v2 = vmul.f32 %v809_v1, %v803_v59 }
 0x85e   :  { %989 = vmatpush.msra.mxu3 %v967_v61  ;;  %v1054_v61 = vld [vmem:[#allocation23 + $0xa8] sm:$0xff] }
 0x85f   :  { %v812_v4 = vsel %vm811_vm5, %v803_v59, %v810_v2 }
 0x860   :  { %v815_v5 = vsel %vm813_vm6, %v814_v3, %v812_v4  ;;  %990 = vmatpush.msra.mxu3 %v966_v62  ;;  %v1047_v62 = vld [vmem:[#allocation23 + $0x70] sm:$0xff] }
 0x861   :  { %1393 = vrcp.f32 %v815_v5  ;;  %v827_v9 = vand.u32 2147483648, %v815_v5  ;;  %v825_v11 = vand.u32 2147483647, %v815_v5  ;;  %vm821_vm8 = vweird.f32 %v815_v5 }
 0x862   :  { %991 = vmatpush.msra.mxu3 %v965_v63  ;;  %v1048_v63 = vld [vmem:[#allocation23 + $0x78] sm:$0xff] }
 0x863   :  { %v828_v13 = vor.u32 1.1754944e-38, %v827_v9  ;;  %vm826_vm11 = vcmp.eq.f32.partialorder %v825_v11, 8.507059e+37 }
 0x867   :  { %v1394_v6 = vpop.eup %1393 }
 0x868   :  { %v817_v7 = vmul.f32 %v1394_v6, %v815_v5  ;;  %vm822_vm7 = vweird.f32 %v1394_v6 }
 0x869   :  { %vm823_vm10 = vmor %vm821_vm8, %vm822_vm7 }
 0x86a   :  { %v818_v8 = vsub.f32 1.0, %v817_v7 }
 0x86c   :  { %v819_v10 = vmul.f32 %v1394_v6, %v818_v8 }
 0x86e   :  { %v820_v12 = vadd.f32 %v1394_v6, %v819_v10 }
 0x870   :  { %v824_v14 = vsel %vm823_vm10, %v1394_v6, %v820_v12 }
 0x871   :  { %v829_v16 = vsel %vm826_vm11, %v828_v13, %v824_v14 }
 0x872   :  { %v830_v17 = vmul.f32 %v829_v16, %v797_v50 }
 0x874   :  { %1322 = vmatmul.msk.f32.vlgmr.msra.gmra.mxu0 %vm341_vm9, %v830_v17 }
 0x8f1   :  { %v859_v19 = vpop.f32.mrf.mxu0 }
 0x8f2   :  { %v860_v20 = vadd.f32 %v1362_v18, %v859_v19 }
 0x8f4   :  { %vm862_vm12 = vcmp.ge.f32.partialorder %v860_v20, 0.0  ;;  %v863_v21 = vmul.f32 0.2, %v860_v20 }
 0x8f6   :  { %v864_v22 = vsel %vm862_vm12, %v860_v20, %v863_v21 }
 0x8f7   :  { %v865_v23 = vmul.f32 %v864_v22, %v864_v22 }
 0x8f9   :  { %v866_v24 = vsel %vm293_vm0, %v865_v23, 0.0 }
 0x8fa   :  { %867 = vadd.xlane.f32.xlu1 %v866_v24 }
 0x96d   :  { %v868_v29 = vpop.xlane.xlu1 %867 }
 0x96e   :  { %v869_v30 = vmul.f32 %v868_v29, %v2045_v15 }
 0x970   :  { %v870_v31 = vadd.f32 1e-08, %v869_v30 }
 0x972   :  { %1395 = vrsqrt.f32 %v870_v31  ;;  %vm878_vm13 = vcmp.eq.f32.partialorder %v870_v31, inf  ;;  %v881_v39 = vand.u32 2147483648, %v870_v31  ;;  %vm880_vm14 = vcmp.eq.f32.partialorder %v870_v31, 0.0 }
 0x978   :  { %v1396_v32 = vpop.eup %1395 }
 0x979   :  { %v872_v33 = vmul.f32 %v1396_v32, %v870_v31 }
 0x97b   :  { %v873_v34 = vmul.f32 %v1396_v32, %v872_v33 }
 0x97d   :  { %v874_v35 = vmul.f32 0.5, %v873_v34 }
 0x97f   :  { %v875_v36 = vsub.f32 1.5, %v874_v35  ;;  %v1059_v35 = vld [vmem:[#allocation23 + $0xd0] sm:$0xff] }
 0x980   :  { %1138 = vmatpush.msrb.mxu2 %v1059_v35 }
 0x981   :  { %v876_v37 = vmul.f32 %v1396_v32, %v875_v36  ;;  %v1060_v36 = vld [vmem:[#allocation23 + $0xd8] sm:$0xff] }
 0x982   :  { %1158 = vmatpush.msrb.mxu3 %v1060_v36 }
 0x983   :  { %v877_v38 = vmul.f32 %v876_v37, %v870_v31  ;;  %v1057_v37 = vld [vmem:[#allocation23 + $0xc0] sm:$0xff] }
 0x984   :  { %1098 = vmatpush.msrb.mxu1 %v1057_v37 }
 0x985   :  { %v879_v40 = vsel %vm878_vm13, %v870_v31, %v877_v38  ;;  %v1058_v38 = vld [vmem:[#allocation23 + $0xc8] sm:$0xff] }
 0x986   :  { %v882_v41 = vsel %vm880_vm14, %v881_v39, %v879_v40  ;;  %1118 = vmatpush.msrb.mxu0 %v1058_v38  ;;  %v1051_v39 = vld [vmem:[#allocation23 + $0x90] sm:$0xff]  ;;  %v1052_v40 = vld [vmem:[#allocation23 + $0x98] sm:$0xff] }
 0x987   :  { %1397 = vrcp.f32 %v882_v41  ;;  %v894_v45 = vand.u32 2147483648, %v882_v41  ;;  %v892_v47 = vand.u32 2147483647, %v882_v41  ;;  %vm888_vm1 = vweird.f32 %v882_v41  ;;  %1139 = vmatpush.msrb.mxu2 %v1051_v39  ;;  %1159 = vmatpush.msrb.mxu3 %v1052_v40 }
 0x989   :  { %v895_v49 = vor.u32 1.1754944e-38, %v894_v45  ;;  %vm893_vm3 = vcmp.eq.f32.partialorder %v892_v47, 8.507059e+37  ;;  %v1042_v45 = vld [vmem:[#allocation23 + $0x48] sm:$0xff]  ;;  %v1035_v47 = vld [vmem:[#allocation23 + $0x10] sm:$0xff] }
 0x98d   :  { %v1398_v42 = vpop.eup %1397 }
 0x98e   :  { %v884_v43 = vmul.f32 %v1398_v42, %v882_v41  ;;  %vm889_vm15 = vweird.f32 %v1398_v42  ;;  %v1049_v41 = vld [vmem:[#allocation23 + $0x80] sm:$0xff] }
 0x98f   :  { %vm890_vm2 = vmor %vm888_vm1, %vm889_vm15  ;;  %1099 = vmatpush.msrb.mxu1 %v1049_v41 }
 0x990   :  { %v885_v44 = vsub.f32 1.0, %v884_v43  ;;  %v1044_v43 = vld [vmem:[#allocation23 + $0x58] sm:$0xff] }
 0x991   :  { %1160 = vmatpush.msrb.mxu3 %v1044_v43 }
 0x992   :  { %v886_v46 = vmul.f32 %v1398_v42, %v885_v44  ;;  %v1041_v44 = vld [vmem:[#allocation23 + $0x40] sm:$0xff] }
 0x993   :  { %1100 = vmatpush.msrb.mxu1 %v1041_v44 }
 0x994   :  { %v887_v48 = vadd.f32 %v1398_v42, %v886_v46 }
 0x996   :  { %v891_v50 = vsel %vm890_vm2, %v1398_v42, %v887_v48  ;;  %v1050_v42 = vld [vmem:[#allocation23 + $0x88] sm:$0xff]  ;;  %v1036_v48 = vld [vmem:[#allocation23 + $0x18] sm:$0xff] }
 0x997   :  { %v896_v51 = vsel %vm893_vm3, %v895_v49, %v891_v50  ;;  %1119 = vmatpush.msrb.mxu0 %v1050_v42  ;;  %v1033_v49 = vld [vmem:[#allocation23] sm:$0xff]  ;;  %1161 = vmatpush.msrb.mxu3 %v1036_v48 }
 0x998   :  { %v897_v52 = vmul.f32 %v896_v51, %v864_v22  ;;  %v1034_v51 = vld [vmem:[#allocation23 + $0x8] sm:$0xff]  ;;  %1101 = vmatpush.msrb.mxu1 %v1033_v49 }
 0x999   :  { %1120 = vmatpush.msrb.mxu0 %v1042_v45 }
 0x99a   :  { %1323 = vmatmul.msk.f32.vlgmr.msra.gmra.mxu2 %vm341_vm9, %v897_v52 }
 0x99b   :  { %1121 = vmatpush.msrb.mxu0 %v1034_v51 }
 0xa1d   :  { %v926_v54 = vpop.f32.mrf.mxu2 }
 0xa1e   :  { %v927_v55 = vadd.f32 %v1363_v53, %v926_v54  ;;  %v1063_v53 = vld [vmem:[#allocation23 + $0xf0] sm:$0xff]  ;;  %v1064_v54 = vld [vmem:[#allocation23 + $0xf8] sm:$0xff] }
 0xa20   :  { %vm929_vm4 = vcmp.ge.f32.partialorder %v927_v55, 0.0  ;;  %v930_v56 = vmul.f32 0.2, %v927_v55 }
 0xa22   :  { %v931_v57 = vsel %vm929_vm4, %v927_v55, %v930_v56  ;;  %v1061_v55 = vld [vmem:[#allocation23 + $0xe0] sm:$0xff]  ;;  %v1062_v56 = vld [vmem:[#allocation23 + $0xe8] sm:$0xff]  ;;  %vm1264_vm4 = vcmask 1043456  }
 0xa23   :  { %v932_v58 = vmul.f32 %v931_v57, %v931_v57  ;;  %1178 = vmatpush.msra.mxu1 %v1061_v55  ;;  %1198 = vmatpush.msra.mxu0 %v1062_v56 }
 0xa25   :  { %v933_v59 = vsel %vm293_vm0, %v932_v58, 0.0  ;;  %v1056_v58 = vld [vmem:[#allocation23 + $0xb8] sm:$0xff]  ;;  %1179 = vmatpush.msra.mxu1 %v1053_v60  ;;  %1199 = vmatpush.msra.mxu0 %v1054_v61 }
 0xa26   :  { %934 = vadd.xlane.f32.xlu2 %v933_v59 }
 0xa99   :  { %v935_v0 = vpop.xlane.xlu2 %934 }
 0xa9a   :  { %v936_v1 = vmul.f32 %v935_v0, %v2045_v15  ;;  %v1045_v0 = vld [vmem:[#allocation23 + $0x60] sm:$0xff] }
 0xa9b   :  { %1180 = vmatpush.msra.mxu1 %v1045_v0 }
 0xa9c   :  { %v937_v2 = vadd.f32 1e-08, %v936_v1  ;;  %v1046_v1 = vld [vmem:[#allocation23 + $0x68] sm:$0xff] }
 0xa9d   :  { %1200 = vmatpush.msra.mxu0 %v1046_v1 }
 0xa9e   :  { %1399 = vrsqrt.f32 %v937_v2  ;;  %vm945_vm5 = vcmp.eq.f32.partialorder %v937_v2, inf  ;;  %v948_v10 = vand.u32 2147483648, %v937_v2  ;;  %vm947_vm6 = vcmp.eq.f32.partialorder %v937_v2, 0.0 }
 0xaa4   :  { %v1400_v3 = vpop.eup %1399 }
 0xaa5   :  { %v939_v4 = vmul.f32 %v1400_v3, %v937_v2 }
 0xaa7   :  { %v940_v5 = vmul.f32 %v1400_v3, %v939_v4  ;;  %v1040_v4 = vld [vmem:[#allocation23 + $0x38] sm:$0xff] }
 0xaa9   :  { %v941_v6 = vmul.f32 0.5, %v940_v5  ;;  %v1037_v5 = vld [vmem:[#allocation23 + $0x20] sm:$0xff] }
 0xaaa   :  { %1181 = vmatpush.msra.mxu1 %v1037_v5 }
 0xaab   :  { %v942_v7 = vsub.f32 1.5, %v941_v6  ;;  %v1038_v6 = vld [vmem:[#allocation23 + $0x28] sm:$0xff] }
 0xaac   :  { %1201 = vmatpush.msra.mxu0 %v1038_v6 }
 0xaad   :  { %v943_v8 = vmul.f32 %v1400_v3, %v942_v7  ;;  %v1039_v3 = vld [vmem:[#allocation23 + $0x30] sm:$0xff] }
 0xaaf   :  { %v944_v9 = vmul.f32 %v943_v8, %v937_v2 }
 0xab1   :  { %v946_v11 = vsel %vm945_vm5, %v937_v2, %v944_v9 }
 0xab2   :  { %v949_v12 = vsel %vm947_vm6, %v948_v10, %v946_v11 }
 0xab3   :  { %1401 = vrcp.f32 %v949_v12  ;;  %v961_v17 = vand.u32 2147483648, %v949_v12  ;;  %v959_v19 = vand.u32 2147483647, %v949_v12  ;;  %vm955_vm8 = vweird.f32 %v949_v12 }
 0xab5   :  { %v962_v21 = vor.u32 1.1754944e-38, %v961_v17  ;;  %vm960_vm11 = vcmp.eq.f32.partialorder %v959_v19, 8.507059e+37 }
 0xab9   :  { %v1402_v13 = vpop.eup %1401 }
 0xaba   :  { %v951_v14 = vmul.f32 %v1402_v13, %v949_v12  ;;  %vm956_vm7 = vweird.f32 %v1402_v13 }
 0xabb   :  { %vm957_vm10 = vmor %vm955_vm8, %vm956_vm7 }
 0xabc   :  { %v952_v16 = vsub.f32 1.0, %v951_v14 }
 0xabe   :  { %v953_v18 = vmul.f32 %v1402_v13, %v952_v16 }
 0xac0   :  { %v954_v20 = vadd.f32 %v1402_v13, %v953_v18 }
 0xac2   :  { %v958_v22 = vsel %vm957_vm10, %v1402_v13, %v954_v20 }
 0xac3   :  { %v963_v23 = vsel %vm960_vm11, %v962_v21, %v958_v22 }
 0xac4   :  { %v964_v24 = vmul.f32 %v963_v23, %v931_v57  ;;  %v1055_v57 = vld [vmem:[#allocation23 + $0xb0] sm:$0xff] }
 0xac6   :  { %1324 = vmatmul.msk.f32.vlgmr.msra.gmra.mxu3 %vm341_vm9, %v964_v24  ;;  %v1065_v24 = vld [vmem:[%s2242_s7] sm:$0xff] }
 0xac7   :  { %1238 = vmatpush.msra.mxu3 %v1064_v54  ;;  %v1072_v37 = vperm.slane %v1065_v24, 5  ;;  %v1073_v42 = vperm.slane %v1065_v24, 6  ;;  %v1074_v45 = vperm.slane %v1065_v24, 7 }
 0xac9   :  { %1239 = vmatpush.msra.mxu3 %v1056_v58 }
 0xacb   :  { %1240 = vmatpush.msra.mxu3 %v1048_v63 }
 0xacd   :  { %1241 = vmatpush.msra.mxu3 %v1040_v4 }
 0xb49   :  { %v993_v26 = vpop.f32.mrf.mxu3 }
 0xb4a   :  { %v994_v27 = vadd.f32 %v1364_v25, %v993_v26  ;;  %v1068_v25 = vperm.slane %v1065_v24, 1 }
 0xb4c   :  { %vm996_vm12 = vcmp.ge.f32.partialorder %v994_v27, 0.0  ;;  %v997_v28 = vmul.f32 0.2, %v994_v27 }
 0xb4e   :  { %v2144_v29 = vsel %vm996_vm12, %v994_v27, %v997_v28 }
 0xb4f   :  { %v999_v30 = vmul.f32 %v2144_v29, %v2144_v29 }
 0xb51   :  { %v1000_v31 = vsel %vm293_vm0, %v999_v30, 0.0  ;;  %v1070_v30 = vperm.slane %v1065_v24, 3 }
 0xb52   :  { %1001 = vadd.xlane.f32.xlu0 %v1000_v31  ;;  %v1067_v31 = vperm.slane %v1065_v24, 0 }
 0xbc5   :  { %v1002_v32 = vpop.xlane.xlu0 %1001 }
 0xbc6   :  { %v1003_v33 = vmul.f32 %v1002_v32, %v2045_v15  ;;  %v1043_v15 = vld [vmem:[#allocation23 + $0x50] sm:$0xff] }
 0xbc7   :  { %1140 = vmatpush.msrb.mxu2 %v1043_v15 }
 0xbc8   :  { %v2150_v34 = vadd.f32 1e-08, %v1003_v33 }
 0xbc9   :  { %1141 = vmatpush.msrb.mxu2 %v1035_v47  ;;  %v1071_v47 = vperm.slane %v1065_v24, 4 }
 0xbca   :  { %1403 = vrsqrt.f32 %v2150_v34  ;;  %vm1012_vm13 = vcmp.eq.f32.partialorder %v2150_v34, inf  ;;  %v1015_v9 = vand.u32 2147483648, %v2150_v34  ;;  %vm1014_vm14 = vcmp.eq.f32.partialorder %v2150_v34, 0.0 }
 0xbcb   :  { %1218 = vmatpush.msra.mxu2 %v1063_v53 }
 0xbcd   :  { %1219 = vmatpush.msra.mxu2 %v1055_v57 }
 0xbcf   :  { %1220 = vmatpush.msra.mxu2 %v1047_v62 }
 0xbd0   :  { %v1404_v46 = vpop.eup %1403 }
 0xbd1   :  { %v1006_v50 = vmul.f32 %v1404_v46, %v2150_v34  ;;  %1221 = vmatpush.msra.mxu2 %v1039_v3 }
 0xbd3   :  { %v1007_v52 = vmul.f32 %v1404_v46, %v1006_v50 }
 0xbd5   :  { %v1008_v59 = vmul.f32 0.5, %v1007_v52 }
 0xbd7   :  { %v1009_v2 = vsub.f32 1.5, %v1008_v59 }
 0xbd9   :  { %v1010_v7 = vmul.f32 %v1404_v46, %v1009_v2 }
 0xbdb   :  { %v1011_v8 = vmul.f32 %v1010_v7, %v2150_v34 }
 0xbdd   :  { %v1013_v10 = vsel %vm1012_vm13, %v2150_v34, %v1011_v8 }
 0xbde   :  { %v1016_v11 = vsel %vm1014_vm14, %v1015_v9, %v1013_v10 }
 0xbdf   :  { %1405 = vrcp.f32 %v1016_v11  ;;  %v1028_v16 = vand.u32 2147483648, %v1016_v11  ;;  %v1026_v18 = vand.u32 2147483647, %v1016_v11  ;;  %vm1022_vm1 = vweird.f32 %v1016_v11 }
 0xbe1   :  { %v1029_v20 = vor.u32 1.1754944e-38, %v1028_v16  ;;  %vm1027_vm3 = vcmp.eq.f32.partialorder %v1026_v18, 8.507059e+37 }
 0xbe5   :  { %v1406_v12 = vpop.eup %1405 }
 0xbe6   :  { %v1018_v13 = vmul.f32 %v1406_v12, %v1016_v11  ;;  %vm1023_vm15 = vweird.f32 %v1406_v12 }
 0xbe7   :  { %vm1024_vm2 = vmor %vm1022_vm1, %vm1023_vm15 }
 0xbe8   :  { %v1019_v14 = vsub.f32 1.0, %v1018_v13 }
 0xbea   :  { %v1020_v17 = vmul.f32 %v1406_v12, %v1019_v14 }
 0xbec   :  { %v1021_v19 = vadd.f32 %v1406_v12, %v1020_v17 }
 0xbee   :  { %v1025_v21 = vsel %vm1024_vm2, %v1406_v12, %v1021_v19 }
 0xbef   :  { %v1030_v22 = vsel %vm1027_vm3, %v1029_v20, %v1025_v21 }
 0xbf0   :  { %v1031_v23 = vmul.f32 %v1030_v22, %v2144_v29  ;;  %v1069_v29 = vperm.slane %v1065_v24, 2 }
 0xbf2   :  { %1032 = vst.msk [vmem:[#allocation25] sm:$0x3] %vm293_vm0, %v1031_v23  ;;  %1325 = vmatmul.msk.f32.vlgmr.msrb.gmra.mxu1 %vm341_vm9, %v1031_v23  ;;  %1326 = vmatmul.msk.f32.vlgmr.msrb.gmra.mxu0 %vm341_vm9, %v1031_v23  ;;  %vm1260_vm0 = vcmask 1041408  }
 0xbf3   :  { %1327 = vmatmul.msk.f32.vlgmr.msrb.gmra.mxu2 %vm341_vm9, %v1031_v23  ;;  %1328 = vmatmul.msk.f32.vlgmr.msrb.gmra.mxu3 %vm341_vm9, %v1031_v23  ;;  %1283 = dma.vmem_to_hbm [thread:$0]  %s1279_s11, 32, %s1281_s12, [#allocation4]  }
 0xbfa   :  { %1329 = vmatmul.msk.f32.vlgmr.msra.gmra.mxu1 %vm341_vm9, %v1031_v23  ;;  %1330 = vmatmul.msk.f32.vlgmr.msra.gmra.mxu0 %vm341_vm9, %v1031_v23 }
 0xbfb   :  { %1331 = vmatmul.msk.f32.vlgmr.msra.gmra.mxu2 %vm341_vm9, %v1031_v23  ;;  %1332 = vmatmul.msk.f32.vlgmr.msra.gmra.mxu3 %vm341_vm9, %v1031_v23  ;;  %vm1262_vm9 = vcmask 1045508  }
 0xc6f   :  { %v1123_v26 = vpop.f32.mrf.mxu0  ;;  %v1103_v27 = vpop.f32.mrf.mxu1 }
 0xc70   :  { %v1124_v28 = vadd.f32 %v1123_v26, %v1068_v25  ;;  %v1104_v39 = vadd.f32 %v1103_v27, %v1067_v31 }
 0xc72   :  { %v1254_v34 = vrot.slane %v1124_v28, 6 }
 0xc74   :  { %v1261_v15 = vsel %vm1260_vm0, %v1104_v39, %v1254_v34 }
 0xc76   :  { %v1143_v32 = vpop.f32.mrf.mxu2  ;;  %v1163_v33 = vpop.f32.mrf.mxu3 }
 0xc77   :  { %v1144_v35 = vadd.f32 %v1143_v32, %v1069_v29  ;;  %v1164_v36 = vadd.f32 %v1163_v33, %v1070_v30  ;;  %v1203_v38 = vpop.f32.mrf.mxu0  ;;  %v1183_v48 = vpop.f32.mrf.mxu1 }
 0xc78   :  { %v1204_v44 = vadd.f32 %v1203_v38, %v1072_v37  ;;  %v1184_v54 = vadd.f32 %v1183_v48, %v1071_v47 }
 0xc79   :  { %v1255_v40 = vrot.slane %v1144_v35, 4  ;;  %v1256_v41 = vrot.slane %v1164_v36, 2 }
 0xc7a   :  { %v1257_v51 = vrot.slane %v1204_v44, 6 }
 0xc7b   :  { %v1263_v43 = vsel %vm1262_vm9, %v1255_v40, %v1256_v41 }
 0xc7c   :  { %v1265_v46 = vsel %vm1264_vm4, %v1261_v15, %v1263_v43  ;;  %v1266_v57 = vsel %vm1260_vm0, %v1184_v54, %v1257_v51 }
 0xc7d   :  { %1271 = vst [vmem:[#allocation26] sm:$0xff] %v1265_v46 }
 0xc7e   :  { %v1223_v49 = vpop.f32.mrf.mxu2  ;;  %v1243_v50 = vpop.f32.mrf.mxu3 }
 0xc7f   :  { %v1224_v52 = vadd.f32 %v1223_v49, %v1073_v42  ;;  %v1244_v53 = vadd.f32 %v1243_v50, %v1074_v45 }
 0xc81   :  { %v1258_v55 = vrot.slane %v1224_v52, 4  ;;  %v1259_v56 = vrot.slane %v1244_v53, 2 }
 0xc83   :  { %v1267_v58 = vsel %vm1262_vm9, %v1258_v55, %v1259_v56 }
 0xc84   :  { %v1268_v59 = vsel %vm1264_vm4, %v1266_v57, %v1267_v58 }
 0xc85   :  { %1272 = vst [vmem:[#allocation26 + $0x8] sm:$0xff] %v1268_v59 }
 0xc86   :  { %1294 = dma.vmem_to_hbm [thread:$0]  %s1290_s25, 256, %s1292_s4, [#allocation27]  }
 0xc87   :  { %1807 = dma.done.wait [#allocation4], 32  }
 0xc88   :  { %1808 = vsyncadd [#allocation4], 4294967264 }
 0xc89   :  { %1809 = dma.done.wait [#allocation27], 256  }
 0xc8a   :  { %1810 = vsyncadd [#allocation27], 4294967040 }
 0xc8b   :  { %1303 = vsyncpa [#allocation3], 1 }
 0xc8c   :  { %1304 = vsyncpa [#allocation6], 1 }
 0xc8d   :  { %1305 = vsyncpa [#allocation9], 1 }
 0xc8e   :  { %1306 = vsyncpa [#allocation12], 1 }
 0xc8f   :  { %1307 = vsyncpa [#allocation15], 1 }
 0xc90   :  { %1308 = vsyncpa [#allocation18], 1 }
 0xc91   :  { %1309 = vsyncpa [#allocation21], 1 }
 0xc92   :  { %1310 = vsyncpa [#allocation24], 1 }
 0xc93   :  { %1311 = vsyncpa [#allocation4], 1 }
 0xc94   :  { %1312 = vsyncpa [#allocation27], 1 }

</bundles_post_ra>
